<compile_context>
chip_gen: v6e
topology: v6e:2x2x1
jax: 0.10.0
libtpu: 0.0.40
codegen_flags: <defaults>
</compile_context>

<pallas_src>
import functools

import jax
import jax.numpy as jnp
from jax.experimental import pallas as pl
from jax.experimental.pallas import tpu as pltpu


def _ivc_kernel(w_ref, x_ref, o_ref, *, K, C, Yo, Zo, S, stride):
    """One grid step = one (batch b, output row xo).

    w_ref: (K, O, K*K*C)  full weight, grid-constant block index (fetched once)
    x_ref: (C, X, Y, L)   full input volume of batch b (fetched once per b)
    o_ref: (O, Yo*Zo*S)   lane-dense output block for (b, xo), written once
    """
    ZoS = Zo * S
    row0 = pl.program_id(1) * stride
    # The K input X-rows needed for this output row (dynamic start, static K).
    window = x_ref[:, pl.ds(row0, K), :, :]                     # (C, K, Y, L)

    acc = jnp.zeros(o_ref.shape, dtype=jnp.float32)             # (O, Yo*ZoS)
    for kx in range(K):
        plane = window[:, kx, :, :]                             # (C, Y, L)
        # In-VMEM im2col: pack the K*K (C, Yo, ZoS) window slices into one
        # (K*K*C, Yo*ZoS) slab whose row order matches the weight layout
        # (ky*K + kz)*C + c.  No im2col buffer ever touches HBM.
        pieces = []
        for ky in range(K):
            for kz in range(K):
                lane0 = kz * (S if stride == 1 else ZoS)
                if stride == 1:
                    blk = plane[:, ky:ky + Yo, lane0:lane0 + ZoS]
                else:
                    blk = jnp.stack(
                        [plane[:, yo * stride + ky, lane0:lane0 + ZoS]
                         for yo in range(Yo)], axis=1)
                pieces.append(blk.reshape(C, Yo * ZoS))
        slab = jnp.concatenate(pieces, axis=0)                  # (K*K*C, Yo*ZoS)
        acc = acc + jnp.dot(w_ref[kx], slab,
                            preferred_element_type=jnp.float32)
    o_ref[...] = acc.astype(o_ref.dtype)


def intra_voxel_conv(x, weight, kernel_size, stride=1):
    """x: (B, C, X, Y, Z, S); weight: (O, K^3*C). Returns (B, Xo, Yo, Zo, O, S)."""
    B, C, X, Y, Z, S = x.shape
    K = kernel_size
    O = weight.shape[0]
    assert weight.shape == (O, K ** 3 * C)
    Xo = (X - K) // stride + 1
    Yo = (Y - K) // stride + 1
    Zo = (Z - K) // stride + 1
    ZoS = Zo * S

    weight = weight.astype(x.dtype)        # keep activations/weights in x.dtype

    if stride == 1:
        # Free reshape: lane index = z*S + s, each kz is a contiguous lane range.
        x5 = x.reshape(B, C, X, Y, Z * S)
        L = Z * S
    else:
        # TODO(synk): review suggests replacing this one-time, input-sized
        # Z-window pre-gather with strided pl.ds lane reads inside the kernel;
        # kept here because multi-dim strided ref reads are not guaranteed to
        # lower cleanly on all generations.
        zsl = [x[:, :, :, :, kz:kz + stride * (Zo - 1) + 1:stride, :]
               for kz in range(K)]
        x5 = jnp.stack(zsl, axis=4).reshape(B, C, X, Y, K * ZoS)
        L = K * ZoS

    # (K, O, K*K*C): w_kx[kx, o, (ky*K+kz)*C + c] == weight[o, m]
    w_kx = jnp.transpose(weight.reshape(O, K, K * K * C), (1, 0, 2))

    kern = functools.partial(_ivc_kernel, K=K, C=C, Yo=Yo, Zo=Zo, S=S,
                             stride=stride)

    itemsize = x5.dtype.itemsize
    vmem_est = (2 * C * X * Y * L * itemsize            # double-buffered input
                + 2 * K * O * K * K * C * itemsize      # weight block
                + 2 * O * Yo * ZoS * itemsize           # output block
                + 6 * K * K * C * Yo * ZoS * 4)         # slab / acc temporaries
    vmem_limit = int(min(64 * 2 ** 20, max(16 * 2 ** 20, 4 * vmem_est)))

    flops = 2 * B * Xo * Yo * Zo * S * O * (K ** 3) * C
    bytes_accessed = (B * C * X * Y * L * itemsize
                      + w_kx.size * itemsize
                      + B * Xo * O * Yo * ZoS * itemsize)

    out = pl.pallas_call(
        kern,
        out_shape=jax.ShapeDtypeStruct((B, Xo, O, Yo * ZoS), x.dtype),
        grid_spec=pltpu.PrefetchScalarGridSpec(
            num_scalar_prefetch=0,
            grid=(B, Xo),
            in_specs=[
                # weight: grid-constant block index -> DMAed once.
                pl.BlockSpec((K, O, K * K * C), lambda b, i: (0, 0, 0)),
                # full per-batch input volume; block index depends only on b,
                # so each batch is read from HBM exactly once (fused im2col).
                pl.BlockSpec((None, C, X, Y, L), lambda b, i: (b, 0, 0, 0, 0)),
            ],
            # lane-dense output block, written once per step (no revisiting).
            out_specs=pl.BlockSpec((None, None, O, Yo * ZoS),
                                   lambda b, i: (b, i, 0, 0)),
        ),
        compiler_params=pltpu.CompilerParams(
            dimension_semantics=("parallel", "parallel"),
            vmem_limit_bytes=vmem_limit,
        ),
        cost_estimate=pl.CostEstimate(flops=flops, transcendentals=0,
                                      bytes_accessed=bytes_accessed),
    )(w_kx, x5)

    # Output-sized reshuffle only: (B, Xo, O, Yo*Zo*S) -> (B, Xo, Yo, Zo, O, S).
    out = out.reshape(B, Xo, O, Yo, Zo, S)
    return jnp.transpose(out, (0, 1, 3, 4, 2, 5))


def _reference(x, weight, kernel_size, stride=1):
    """Independent reference via lax 3D convolution vmapped over the sphere dim."""
    O = weight.shape[0]
    C = x.shape[1]
    K = kernel_size
    w5 = weight.reshape(O, K, K, K, C)
    w_conv = jnp.transpose(w5, (0, 4, 1, 2, 3))          # (O, C, K, K, K)

    def conv_one(xs):                                     # xs: (B, C, X, Y, Z)
        return jax.lax.conv_general_dilated(
            xs, w_conv, window_strides=(stride,) * 3, padding="VALID",
            dimension_numbers=("NCDHW", "OIDHW", "NCDHW"))

    ref = jax.vmap(conv_one, in_axes=5, out_axes=5)(x)    # (B, O, Xo, Yo, Zo, S)
    return jnp.transpose(ref, (0, 2, 3, 4, 1, 5))         # (B, Xo, Yo, Zo, O, S)


if __name__ == "__main__":
    B, C, X, Y, Z, S = 2, 4, 8, 8, 8, 8
    K, O = 3, 8

    key = jax.random.PRNGKey(0)
    kx_key, kw_key = jax.random.split(key)
    x = jax.random.normal(kx_key, (B, C, X, Y, Z, S), dtype=jnp.float32)
    # torch.rand -> uniform [0, 1), deterministic synthetic init
    weight = jax.random.uniform(kw_key, (O, K ** 3 * C), dtype=jnp.float32)

    for stride in (1, 2):
        fn = jax.jit(functools.partial(intra_voxel_conv,
                                       kernel_size=K, stride=stride))
        out = jax.block_until_ready(fn(x, weight))
        ref = jax.block_until_ready(_reference(x, weight, K, stride))
        assert out.shape == ref.shape, (stride, out.shape, ref.shape)
        assert jnp.allclose(out, ref, rtol=1e-4, atol=1e-4), (
            stride, float(jnp.max(jnp.abs(out - ref))))

    print("KERNEL_OK")
</pallas_src>

<mosaic_0001>
module attributes {stable_mosaic.version = 11 : i64} {
  func.func @_ivc_kernel(%arg0: i32, %arg1: i32, %arg2: memref<3x8x36xf32, #tpu.memory_space<vmem>>, %arg3: memref<1x4x8x8x64xf32, #tpu.memory_space<vmem>>, %arg4: memref<1x1x8x288xf32, #tpu.memory_space<vmem>>) attributes {dimension_semantics = [#tpu.dimension_semantics<parallel>, #tpu.dimension_semantics<parallel>], iteration_bounds = array<i64: 2, 6>, scalar_prefetch = 0 : i64, scratch_operands = 0 : i64, tpu.core_type = #tpu.core_type<tc>, window_params = [{pipeline_mode = #tpu.pipeline_mode<synchronous>, transform_indices = @transform_0, window_bounds = array<i64: 3, 8, 36>}, {transform_indices = @transform_1, window_bounds = array<i64: 1, 4, 8, 8, 64>}, {transform_indices = @transform_2, window_bounds = array<i64: 1, 1, 8, 288>}]} {
    %c1_i32 = arith.constant 1 : i32
    %0 = arith.muli %arg1, %c1_i32 : i32
    %c0 = arith.constant 0 : index
    %c0_0 = arith.constant 0 : index
    %1 = arith.index_cast %0 : i32 to index
    %c0_1 = arith.constant 0 : index
    %c0_2 = arith.constant 0 : index
    %2 = vector.load %arg3[%c0, %c0_0, %1, %c0_1, %c0_2] : memref<1x4x8x8x64xf32, #tpu.memory_space<vmem>>, vector<1x4x3x8x64xf32>
    %3 = vector.shape_cast %2 : vector<1x4x3x8x64xf32> to vector<4x3x8x64xf32>
    %cst = arith.constant 0.000000e+00 : f32
    %4 = vector.broadcast %cst : f32 to vector<8x288xf32>
    %5 = vector.extract_strided_slice %3 {offsets = [0, 0, 0, 0], sizes = [4, 1, 8, 64], strides = [1, 1, 1, 1]} : vector<4x3x8x64xf32> to vector<4x1x8x64xf32>
    %6 = vector.shape_cast %5 : vector<4x1x8x64xf32> to vector<4x8x64xf32>
    %7 = vector.extract_strided_slice %6 {offsets = [0, 0, 0], sizes = [4, 6, 48], strides = [1, 1, 1]} : vector<4x8x64xf32> to vector<4x6x48xf32>
    %8 = vector.shape_cast %7 : vector<4x6x48xf32> to vector<4x288xf32>
    %9 = vector.extract_strided_slice %6 {offsets = [0, 0, 8], sizes = [4, 6, 48], strides = [1, 1, 1]} : vector<4x8x64xf32> to vector<4x6x48xf32>
    %10 = vector.shape_cast %9 : vector<4x6x48xf32> to vector<4x288xf32>
    %11 = vector.extract_strided_slice %6 {offsets = [0, 0, 16], sizes = [4, 6, 48], strides = [1, 1, 1]} : vector<4x8x64xf32> to vector<4x6x48xf32>
    %12 = vector.shape_cast %11 : vector<4x6x48xf32> to vector<4x288xf32>
    %13 = vector.extract_strided_slice %6 {offsets = [0, 1, 0], sizes = [4, 6, 48], strides = [1, 1, 1]} : vector<4x8x64xf32> to vector<4x6x48xf32>
    %14 = vector.shape_cast %13 : vector<4x6x48xf32> to vector<4x288xf32>
    %15 = vector.extract_strided_slice %6 {offsets = [0, 1, 8], sizes = [4, 6, 48], strides = [1, 1, 1]} : vector<4x8x64xf32> to vector<4x6x48xf32>
    %16 = vector.shape_cast %15 : vector<4x6x48xf32> to vector<4x288xf32>
    %17 = vector.extract_strided_slice %6 {offsets = [0, 1, 16], sizes = [4, 6, 48], strides = [1, 1, 1]} : vector<4x8x64xf32> to vector<4x6x48xf32>
    %18 = vector.shape_cast %17 : vector<4x6x48xf32> to vector<4x288xf32>
    %19 = vector.extract_strided_slice %6 {offsets = [0, 2, 0], sizes = [4, 6, 48], strides = [1, 1, 1]} : vector<4x8x64xf32> to vector<4x6x48xf32>
    %20 = vector.shape_cast %19 : vector<4x6x48xf32> to vector<4x288xf32>
    %21 = vector.extract_strided_slice %6 {offsets = [0, 2, 8], sizes = [4, 6, 48], strides = [1, 1, 1]} : vector<4x8x64xf32> to vector<4x6x48xf32>
    %22 = vector.shape_cast %21 : vector<4x6x48xf32> to vector<4x288xf32>
    %23 = vector.extract_strided_slice %6 {offsets = [0, 2, 16], sizes = [4, 6, 48], strides = [1, 1, 1]} : vector<4x8x64xf32> to vector<4x6x48xf32>
    %24 = vector.shape_cast %23 : vector<4x6x48xf32> to vector<4x288xf32>
    %25 = tpu.concatenate %8, %10, %12, %14, %16, %18, %20, %22, %24 in 0 : vector<4x288xf32>, vector<4x288xf32>, vector<4x288xf32>, vector<4x288xf32>, vector<4x288xf32>, vector<4x288xf32>, vector<4x288xf32>, vector<4x288xf32>, vector<4x288xf32> -> vector<36x288xf32>
    %c0_3 = arith.constant 0 : index
    %c0_4 = arith.constant 0 : index
    %c0_5 = arith.constant 0 : index
    %26 = vector.load %arg2[%c0_3, %c0_4, %c0_5] : memref<3x8x36xf32, #tpu.memory_space<vmem>>, vector<1x8x36xf32>
    %27 = vector.shape_cast %26 : vector<1x8x36xf32> to vector<8x36xf32>
    %cst_6 = arith.constant dense<0.000000e+00> : vector<8x288xf32>
    %28 = tpu.matmul %27, %25, %cst_6 {dimension_numbers = #tpu.dot_dimension_numbers<[1], [0], [0], [1], [0, 0, 1, 1], [], []>} : vector<8x36xf32>, vector<36x288xf32>, vector<8x288xf32> -> vector<8x288xf32>
    %29 = arith.addf %4, %28 : vector<8x288xf32>
    %30 = vector.extract_strided_slice %3 {offsets = [0, 1, 0, 0], sizes = [4, 1, 8, 64], strides = [1, 1, 1, 1]} : vector<4x3x8x64xf32> to vector<4x1x8x64xf32>
    %31 = vector.shape_cast %30 : vector<4x1x8x64xf32> to vector<4x8x64xf32>
    %32 = vector.extract_strided_slice %31 {offsets = [0, 0, 0], sizes = [4, 6, 48], strides = [1, 1, 1]} : vector<4x8x64xf32> to vector<4x6x48xf32>
    %33 = vector.shape_cast %32 : vector<4x6x48xf32> to vector<4x288xf32>
    %34 = vector.extract_strided_slice %31 {offsets = [0, 0, 8], sizes = [4, 6, 48], strides = [1, 1, 1]} : vector<4x8x64xf32> to vector<4x6x48xf32>
    %35 = vector.shape_cast %34 : vector<4x6x48xf32> to vector<4x288xf32>
    %36 = vector.extract_strided_slice %31 {offsets = [0, 0, 16], sizes = [4, 6, 48], strides = [1, 1, 1]} : vector<4x8x64xf32> to vector<4x6x48xf32>
    %37 = vector.shape_cast %36 : vector<4x6x48xf32> to vector<4x288xf32>
    %38 = vector.extract_strided_slice %31 {offsets = [0, 1, 0], sizes = [4, 6, 48], strides = [1, 1, 1]} : vector<4x8x64xf32> to vector<4x6x48xf32>
    %39 = vector.shape_cast %38 : vector<4x6x48xf32> to vector<4x288xf32>
    %40 = vector.extract_strided_slice %31 {offsets = [0, 1, 8], sizes = [4, 6, 48], strides = [1, 1, 1]} : vector<4x8x64xf32> to vector<4x6x48xf32>
    %41 = vector.shape_cast %40 : vector<4x6x48xf32> to vector<4x288xf32>
    %42 = vector.extract_strided_slice %31 {offsets = [0, 1, 16], sizes = [4, 6, 48], strides = [1, 1, 1]} : vector<4x8x64xf32> to vector<4x6x48xf32>
    %43 = vector.shape_cast %42 : vector<4x6x48xf32> to vector<4x288xf32>
    %44 = vector.extract_strided_slice %31 {offsets = [0, 2, 0], sizes = [4, 6, 48], strides = [1, 1, 1]} : vector<4x8x64xf32> to vector<4x6x48xf32>
    %45 = vector.shape_cast %44 : vector<4x6x48xf32> to vector<4x288xf32>
    %46 = vector.extract_strided_slice %31 {offsets = [0, 2, 8], sizes = [4, 6, 48], strides = [1, 1, 1]} : vector<4x8x64xf32> to vector<4x6x48xf32>
    %47 = vector.shape_cast %46 : vector<4x6x48xf32> to vector<4x288xf32>
    %48 = vector.extract_strided_slice %31 {offsets = [0, 2, 16], sizes = [4, 6, 48], strides = [1, 1, 1]} : vector<4x8x64xf32> to vector<4x6x48xf32>
    %49 = vector.shape_cast %48 : vector<4x6x48xf32> to vector<4x288xf32>
    %50 = tpu.concatenate %33, %35, %37, %39, %41, %43, %45, %47, %49 in 0 : vector<4x288xf32>, vector<4x288xf32>, vector<4x288xf32>, vector<4x288xf32>, vector<4x288xf32>, vector<4x288xf32>, vector<4x288xf32>, vector<4x288xf32>, vector<4x288xf32> -> vector<36x288xf32>
    %c1 = arith.constant 1 : index
    %c0_7 = arith.constant 0 : index
    %c0_8 = arith.constant 0 : index
    %51 = vector.load %arg2[%c1, %c0_7, %c0_8] : memref<3x8x36xf32, #tpu.memory_space<vmem>>, vector<1x8x36xf32>
    %52 = vector.shape_cast %51 : vector<1x8x36xf32> to vector<8x36xf32>
    %cst_9 = arith.constant dense<0.000000e+00> : vector<8x288xf32>
    %53 = tpu.matmul %52, %50, %cst_9 {dimension_numbers = #tpu.dot_dimension_numbers<[1], [0], [0], [1], [0, 0, 1, 1], [], []>} : vector<8x36xf32>, vector<36x288xf32>, vector<8x288xf32> -> vector<8x288xf32>
    %54 = arith.addf %29, %53 : vector<8x288xf32>
    %55 = vector.extract_strided_slice %3 {offsets = [0, 2, 0, 0], sizes = [4, 1, 8, 64], strides = [1, 1, 1, 1]} : vector<4x3x8x64xf32> to vector<4x1x8x64xf32>
    %56 = vector.shape_cast %55 : vector<4x1x8x64xf32> to vector<4x8x64xf32>
    %57 = vector.extract_strided_slice %56 {offsets = [0, 0, 0], sizes = [4, 6, 48], strides = [1, 1, 1]} : vector<4x8x64xf32> to vector<4x6x48xf32>
    %58 = vector.shape_cast %57 : vector<4x6x48xf32> to vector<4x288xf32>
    %59 = vector.extract_strided_slice %56 {offsets = [0, 0, 8], sizes = [4, 6, 48], strides = [1, 1, 1]} : vector<4x8x64xf32> to vector<4x6x48xf32>
    %60 = vector.shape_cast %59 : vector<4x6x48xf32> to vector<4x288xf32>
    %61 = vector.extract_strided_slice %56 {offsets = [0, 0, 16], sizes = [4, 6, 48], strides = [1, 1, 1]} : vector<4x8x64xf32> to vector<4x6x48xf32>
    %62 = vector.shape_cast %61 : vector<4x6x48xf32> to vector<4x288xf32>
    %63 = vector.extract_strided_slice %56 {offsets = [0, 1, 0], sizes = [4, 6, 48], strides = [1, 1, 1]} : vector<4x8x64xf32> to vector<4x6x48xf32>
    %64 = vector.shape_cast %63 : vector<4x6x48xf32> to vector<4x288xf32>
    %65 = vector.extract_strided_slice %56 {offsets = [0, 1, 8], sizes = [4, 6, 48], strides = [1, 1, 1]} : vector<4x8x64xf32> to vector<4x6x48xf32>
    %66 = vector.shape_cast %65 : vector<4x6x48xf32> to vector<4x288xf32>
    %67 = vector.extract_strided_slice %56 {offsets = [0, 1, 16], sizes = [4, 6, 48], strides = [1, 1, 1]} : vector<4x8x64xf32> to vector<4x6x48xf32>
    %68 = vector.shape_cast %67 : vector<4x6x48xf32> to vector<4x288xf32>
    %69 = vector.extract_strided_slice %56 {offsets = [0, 2, 0], sizes = [4, 6, 48], strides = [1, 1, 1]} : vector<4x8x64xf32> to vector<4x6x48xf32>
    %70 = vector.shape_cast %69 : vector<4x6x48xf32> to vector<4x288xf32>
    %71 = vector.extract_strided_slice %56 {offsets = [0, 2, 8], sizes = [4, 6, 48], strides = [1, 1, 1]} : vector<4x8x64xf32> to vector<4x6x48xf32>
    %72 = vector.shape_cast %71 : vector<4x6x48xf32> to vector<4x288xf32>
    %73 = vector.extract_strided_slice %56 {offsets = [0, 2, 16], sizes = [4, 6, 48], strides = [1, 1, 1]} : vector<4x8x64xf32> to vector<4x6x48xf32>
    %74 = vector.shape_cast %73 : vector<4x6x48xf32> to vector<4x288xf32>
    %75 = tpu.concatenate %58, %60, %62, %64, %66, %68, %70, %72, %74 in 0 : vector<4x288xf32>, vector<4x288xf32>, vector<4x288xf32>, vector<4x288xf32>, vector<4x288xf32>, vector<4x288xf32>, vector<4x288xf32>, vector<4x288xf32>, vector<4x288xf32> -> vector<36x288xf32>
    %c2 = arith.constant 2 : index
    %c0_10 = arith.constant 0 : index
    %c0_11 = arith.constant 0 : index
    %76 = vector.load %arg2[%c2, %c0_10, %c0_11] : memref<3x8x36xf32, #tpu.memory_space<vmem>>, vector<1x8x36xf32>
    %77 = vector.shape_cast %76 : vector<1x8x36xf32> to vector<8x36xf32>
    %cst_12 = arith.constant dense<0.000000e+00> : vector<8x288xf32>
    %78 = tpu.matmul %77, %75, %cst_12 {dimension_numbers = #tpu.dot_dimension_numbers<[1], [0], [0], [1], [0, 0, 1, 1], [], []>} : vector<8x36xf32>, vector<36x288xf32>, vector<8x288xf32> -> vector<8x288xf32>
    %79 = arith.addf %54, %78 : vector<8x288xf32>
    %c0_13 = arith.constant 0 : index
    %c0_14 = arith.constant 0 : index
    %c0_15 = arith.constant 0 : index
    %c0_16 = arith.constant 0 : index
    %80 = vector.load %arg4[%c0_13, %c0_14, %c0_15, %c0_16] : memref<1x1x8x288xf32, #tpu.memory_space<vmem>>, vector<1x1x8x288xf32>
    %81 = vector.shape_cast %80 : vector<1x1x8x288xf32> to vector<8x288xf32>
    %82 = vector.shape_cast %79 : vector<8x288xf32> to vector<1x1x8x288xf32>
    tpu.vector_store %arg4[%c0_13, %c0_14, %c0_15, %c0_16], %82 {strides = array<i32>} : memref<1x1x8x288xf32, #tpu.memory_space<vmem>>, vector<1x1x8x288xf32>,
    return
  }
  func.func @transform_0(%arg0: i32, %arg1: i32) -> (i32, i32, i32) {
    %c0_i32 = arith.constant 0 : i32
    %c0_i32_0 = arith.constant 0 : i32
    %c0_i32_1 = arith.constant 0 : i32
    %c0_i32_2 = arith.constant 0 : i32
    return %c0_i32, %c0_i32_0, %c0_i32_1 : i32, i32, i32
  }
  func.func @transform_1(%arg0: i32, %arg1: i32) -> (i32, i32, i32, i32, i32) {
    %c0_i32 = arith.constant 0 : i32
    %c0_i32_0 = arith.constant 0 : i32
    %c0_i32_1 = arith.constant 0 : i32
    %c0_i32_2 = arith.constant 0 : i32
    %c0_i32_3 = arith.constant 0 : i32
    return %arg0, %c0_i32, %c0_i32_0, %c0_i32_1, %c0_i32_2 : i32, i32, i32, i32, i32
  }
  func.func @transform_2(%arg0: i32, %arg1: i32) -> (i32, i32, i32, i32) {
    %c0_i32 = arith.constant 0 : i32
    %c0_i32_0 = arith.constant 0 : i32
    %c0_i32_1 = arith.constant 0 : i32
    return %arg0, %arg1, %c0_i32, %c0_i32_0 : i32, i32, i32, i32
  }
}

</mosaic_0001>

<bundles_post_ra>
// kernel: intra_voxel_conv.1
= control target key start
LH: loop header
LB: loop body
LE: loop exit
PB: predicated region body
PF: predicated region fallthrough
CT: control target
= control target key end

     0   :  { %s3626_s9 = smov 0   ;;  %s3628_s10 = smov 0   ;;  %s5376_s0 = inlined_call_operand.vmem [shape: f32[3,8,36], index: 0, kind: input, shape index: {}]   ;;  %s5377_s1 = inlined_call_operand.vmem [shape: f32[2,4,8,8,64], index: 1, kind: input, shape index: {}]   ;;  %s5378_s2 = inlined_call_operand.vmem [shape: f32[2,6,8,288], index: 2, kind: output, shape index: {}]  }
   0x1   :  { %s3630_s11 = smov 0   ;;  %s3632_s12 = smov 0  }
   0x2   :  { %s3634_s13 = smov 0  }
   0x3 LB: > { %s21_s14 = sadd.s32 1, %s3591_s11  ;;  %s24_s15 = sadd.s32 1, %s3595_s12  ;;  %s3599_s13 = sphi %s3634_s13, %s12_s13   ;;  %s3595_s12 = sphi %s3632_s12, %s5500_s12   ;;  %s3591_s11 = sphi %s3630_s11, %s5499_s11   ;;  %s3587_s10 = sphi %s3628_s10, %s5498_s10   ;;  %s3583_s9 = sphi %s3626_s9, %s5497_s9  }
   0x4   : > { %p22_p0 = scmp.ge.s32.totalorder %s21_s14, 6  ;;  %p3423_p1 = scmp.ge.s32.totalorder %s3599_s13, 1 }
   0x5   : > { %p126_p2 = scmp.lt.s32.totalorder %s3599_s13, 13 }
   0x6   : > { %s5502_s14 = smov (%p22_p0, %s21_s14), 0  ;;  %s5504_s15 = smov (!%p22_p0, %s24_s15), %s3595_s12 }
   0x7   : > { %p127_p3 = pnand %p3423_p1, %p126_p2  ;;  %p26_p4 = scmp.ge.s32.totalorder %s5504_s15, 2 }
   0x9   : > { %s5506_s15 = smov (%p26_p4, %s5504_s15), 0  ;;  %130 = sbr.rel (%p127_p3) target bundleno = 780 (0x30c), region = 28 }
   0xe   : > { %p152_p5 = scmp.lt.s32.totalorder %s3587_s10, 1  ;;  %v185_v0 = vlaneseq  ;;  %v3601_v1 = vmov 1983009808   ;;  %v5379_v4 = vmov 0.0   ;;  %s3427_s16 = sshll.u32 %s3583_s9, 3  ;;  %vm3610_vm0 = vmmov 0  }
   0xf   : > { %v183_v2 = vunpack.c.l.s4 %v3601_v1  ;;  %3466 = vmatprep.subr.mxu1 %v5379_v4  ;;  %2049 = vmatprep.mubr.f32.mxu0 %v5379_v4  ;;  %v3603_v6 = vmov 1934713408   ;;  %s3604_s22 = smov 120   ;;  %s3605_s23 = smov 64   ;;  %vm263_vm1 = vcmask 130048   ;;  %vm259_vm2 = vcmask 392192  }
  0x10   : > { %s5508_s10 = smov (!%p152_p5, %s3587_s10), 1  ;;  %v186_v3 = vshrl.u32 %v185_v0, 7  ;;  %v215_v7 = vunpack.c.l.s4 %v3603_v6  ;;  %s3606_s24 = smov 96   ;;  %vm265_vm3 = vcmask 523264   ;;  %vm267_vm4 = vcmask 916480  }
  0x11   : > { %v184_v5 = vunpack.c.0.s8 %v183_v2  ;;  %s3447_s17 = sshll.u32 %s5508_s10, 8  ;;  %s3607_s25 = smov 16   ;;  %vm1065_vm5 = vcmask 1043456   ;;  %vm261_vm6 = vcmask 785408   ;;  %vm1973_vm7 = vcmask 293888  }
  0x12   : > { %s156_s20 = scalar_lea.vmem %s5377_s1, %s3447_s17  ;;  %v216_v12 = vunpack.c.0.s8 %v215_v7  ;;  %s3608_s26 = smov 48   ;;  %vm3329_vm8 = vcmask 261120  }
  0x13   : > { %s3667_s21 = scalar_lea.vmem %s156_s20, %s3427_s16  ;;  %v3669_v8 = vsub.s32 %v184_v5, %v186_v3  ;;  %s3609_s27 = smov 112  }
  0x14   : > { %v3672_v9 = vld [vmem:[%s3667_s21 + $0x40] sm:$0xff]  ;;  %v3709_v24 = vsub.s32 %v216_v12, %v186_v3  ;;  %v3764_v53 = vld [vmem:[%s3667_s21 + $0x8] sm:$0xff]  ;;  %p159_p6 = scmp.lt.s32.totalorder %s3583_s9, 5  ;;  %s3506_s7 = smul.u32 18, %s5508_s10 }
  0x15   : > { %v3675_v10 = vld [vmem:[%s3667_s21] sm:$0xff]  ;;  %275 = vrot.lane.b32.xlu0 %v3672_v9, %s3604_s22  ;;  %v3683_v13 = vrot.slane %v3672_v9, 1  ;;  %v1643_v54 = vrot.slane %v3764_v53, 2  ;;  %v3770_v55 = vld [vmem:[%s3667_s21 + $0x88] sm:$0xff]  ;;  %v3791_v61 = vrot.slane %v3764_v53, 1  ;;  %v3844_v3 = vrot.slane %v3672_v9, 2 }
  0x16   : > { %v3678_v11 = vld [vmem:[%s3667_s21 + $0xc0] sm:$0xff]  ;;  %273 = vrot.lane.b32.xlu1 %v3675_v10, %s3604_s22  ;;  %v3688_v14 = vrot.slane %v3675_v10, 1  ;;  %v3773_v56 = vld [vmem:[%s3667_s21 + $0x48] sm:$0xff]  ;;  %v1645_v57 = vrot.slane %v3770_v55, 2  ;;  %v3797_v62 = vrot.slane %v3770_v55, 1  ;;  %v3834_v1 = vrot.slane %v3675_v10, 2 }
  0x17   : > { %v3691_v15 = vrot.slane %v3678_v11, 1  ;;  %v3694_v16 = vld [vmem:[%s3667_s21 + $0x80] sm:$0xff]  ;;  %v197_v17 = vcombine.high %v3672_v9, %v3678_v11  ;;  %v196_v21 = vcombine.low %v3672_v9, %v3678_v11  ;;  %v1644_v58 = vrot.slane %v3773_v56, 2  ;;  %v3781_v59 = vld [vmem:[%s3667_s21 + $0xc8] sm:$0xff]  ;;  %s5510_s9 = smov (!%p159_p6, %s3583_s9), 5 }
  0x18   : > { %v3699_v18 = vrot.slane %v3694_v16, 1  ;;  %v181_v19 = vcombine.high %v3675_v10, %v3694_v16  ;;  %v180_v20 = vcombine.low %v3675_v10, %v3694_v16  ;;  %v1646_v60 = vrot.slane %v3781_v59, 2  ;;  %s3505_s6 = smul.u32 3, %s5510_s9 }
  0x19   : > { %v211_v22 = vrot.slane %v197_v17, %v3669_v8  ;;  %v204_v26 = vrot.slane %v196_v21, %v3669_v8  ;;  %279 = vrot.lane.b32.xlu0 %v3678_v11, %s3604_s22  ;;  %v489_v27 = vcombine.low %v3683_v13, %v3691_v15  ;;  %v490_v39 = vcombine.high %v3683_v13, %v3691_v15 }
  0x1a   : > { %v195_v23 = vrot.slane %v181_v19, %v3669_v8  ;;  %v188_v25 = vrot.slane %v180_v20, %v3669_v8  ;;  %277 = vrot.lane.b32.xlu1 %v3694_v16, %s3604_s22  ;;  %v473_v31 = vcombine.low %v3688_v14, %v3699_v18  ;;  %v474_v42 = vcombine.high %v3688_v14, %v3699_v18  ;;  %s163_s8 = sadd.s32 %s3506_s7, %s3505_s6 }
  0x1b   : > { %v497_v35 = vrot.slane %v489_v27, %v3669_v8  ;;  %v504_v43 = vrot.slane %v490_v39, %v3669_v8  ;;  %v3800_v63 = vrot.slane %v3773_v56, 1  ;;  %v3807_v0 = vrot.slane %v3781_v59, 1  ;;  %s3426_s16 = sshll.u32 %s163_s8, 3 }
  0x1c   : > { %v228_v28 = vcombine.low %v195_v23, %v211_v22  ;;  %v213_v29 = vcombine.high %v188_v25, %v204_v26  ;;  %v212_v30 = vcombine.low %v188_v25, %v204_v26  ;;  %v481_v38 = vrot.slane %v473_v31, %v3669_v8  ;;  %s165_s19 = scalar_lea.vmem %s5378_s2, %s3426_s16 }
  0x1d   : > { %v488_v46 = vrot.slane %v474_v42, %v3669_v8  ;;  %v3841_v2 = vrot.slane %v3694_v16, 2  ;;  %v3851_v5 = vrot.slane %v3678_v11, 2  ;;  %v1651_v6 = vcombine.low %v1643_v54, %v1645_v57 }
  0x1e   : > { %v235_v32 = vrot.slane %v228_v28, %v3709_v24  ;;  %v227_v33 = vrot.slane %v213_v29, %v3709_v24  ;;  %v3724_v34 = vrot.slane %v212_v30, %v3709_v24  ;;  %v505_v41 = vcombine.low %v481_v38, %v497_v35 }
  0x1f   : > { %v506_v45 = vcombine.high %v481_v38, %v497_v35  ;;  %v521_v49 = vcombine.low %v488_v46, %v504_v43  ;;  %v1667_v7 = vcombine.low %v1644_v58, %v1646_v60 }
  0x20   : > { %5413 = vst [vmem:[#allocation2_spill] sm:$0xff] %v3724_v34  ;;  %252 = vrot.lane.b32.xlu1 %v235_v32, %s3605_s23  ;;  %244 = vrot.lane.b32.xlu0 %v227_v33, %s3606_s24  ;;  %v237_v36 = vcombine.high %v227_v33, %v5379_v4  ;;  %v236_v37 = vcombine.high %v3724_v34, %v5379_v4 }
  0x21   : > { %v238_v40 = vcombine.high %v235_v32, %v5379_v4  ;;  %v3745_v44 = vrot.slane %v505_v41, %v3709_v24  ;;  %v520_v48 = vrot.slane %v506_v45, %v3709_v24  ;;  %v528_v51 = vrot.slane %v521_v49, %v3709_v24 }
  0x22   : > { %v3857_v12 = vrot.slane %v1667_v7, %v3669_v8 }
  0x23   : > { %5414 = vst [vmem:[#allocation3_spill] sm:$0xff] %v3745_v44  ;;  %v529_v47 = vcombine.high %v3745_v44, %v5379_v4  ;;  %v530_v50 = vcombine.high %v520_v48, %v5379_v4  ;;  %v531_v52 = vcombine.high %v528_v51, %v5379_v4 }
  0x24   : > { %248 = vrot.lane.b32.xlu1 %v237_v36, %s3607_s25  ;;  %240 = vrot.lane.b32.xlu0 %v236_v37, %s3608_s26 }
  0x28   : > { %371 = vrot.lane.b32.xlu1 %v3672_v9, %s3609_s27  ;;  %256 = vrot.lane.b32.xlu0 %v238_v40, %s3609_s27 }
  0x2c   : > { %375 = vrot.lane.b32.xlu1 %v3678_v11, %s3609_s27  ;;  %369 = vrot.lane.b32.xlu0 %v3675_v10, %s3609_s27  ;;  %v3854_v10 = vrot.slane %v1651_v6, %v3669_v8  ;;  %v1652_v11 = vcombine.high %v1643_v54, %v1645_v57 }
  0x2e   : > { %v3878_v17 = vrot.slane %v1652_v11, %v3669_v8 }
  0x30   : > { %533 = vrot.lane.b32.xlu1 %v529_v47, %s3608_s26  ;;  %373 = vrot.lane.b32.xlu0 %v3694_v16, %s3609_s27  ;;  %v1668_v16 = vcombine.high %v1644_v58, %v1646_v60 }
  0x32   : > { %v3881_v19 = vrot.slane %v1668_v16, %v3669_v8 }
  0x34   : > { %541 = vrot.lane.b32.xlu1 %v530_v50, %s3607_s25  ;;  %537 = vrot.lane.b32.xlu0 %v520_v48, %s3606_s24 }
  0x38   : > { %549 = vrot.lane.b32.xlu1 %v531_v52, %s3609_s27  ;;  %545 = vrot.lane.b32.xlu0 %v528_v51, %s3605_s23 }
  0x3c   : > { %1735 = vrot.lane.b32.xlu1 %v1643_v54, %s3604_s22  ;;  %557 = vrot.lane.b32.xlu0 %v3688_v14, %s3604_s22 }
  0x40   : > { %1739 = vrot.lane.b32.xlu1 %v1645_v57, %s3604_s22  ;;  %1737 = vrot.lane.b32.xlu0 %v1644_v58, %s3604_s22 }
  0x44   : > { %1831 = vrot.lane.b32.xlu1 %v1643_v54, %s3609_s27  ;;  %1741 = vrot.lane.b32.xlu0 %v1646_v60, %s3604_s22 }
  0x48   : > { %1835 = vrot.lane.b32.xlu1 %v1645_v57, %s3609_s27  ;;  %1833 = vrot.lane.b32.xlu0 %v1644_v58, %s3609_s27 }
  0x4c   : > { %1547 = vrot.lane.b32.xlu1 %v3791_v61, %s3609_s27  ;;  %1837 = vrot.lane.b32.xlu0 %v1646_v60, %s3609_s27 }
  0x50   : > { %1551 = vrot.lane.b32.xlu1 %v3797_v62, %s3609_s27  ;;  %1549 = vrot.lane.b32.xlu0 %v3800_v63, %s3609_s27 }
  0x54   : > { %1451 = vrot.lane.b32.xlu1 %v3791_v61, %s3604_s22  ;;  %1553 = vrot.lane.b32.xlu0 %v3807_v0, %s3609_s27 }
  0x58   : > { %1455 = vrot.lane.b32.xlu1 %v3797_v62, %s3604_s22  ;;  %1453 = vrot.lane.b32.xlu0 %v3800_v63, %s3604_s22 }
  0x5c   : > { %1167 = vrot.lane.b32.xlu1 %v3764_v53, %s3604_s22  ;;  %1457 = vrot.lane.b32.xlu0 %v3807_v0, %s3604_s22 }
  0x60   : > { %1171 = vrot.lane.b32.xlu1 %v3770_v55, %s3604_s22  ;;  %1169 = vrot.lane.b32.xlu0 %v3773_v56, %s3604_s22 }
  0x64   : > { %1263 = vrot.lane.b32.xlu1 %v3764_v53, %s3609_s27  ;;  %1173 = vrot.lane.b32.xlu0 %v3781_v59, %s3604_s22 }
  0x68   : > { %1267 = vrot.lane.b32.xlu1 %v3770_v55, %s3609_s27  ;;  %1265 = vrot.lane.b32.xlu0 %v3773_v56, %s3609_s27 }
  0x6c   : > { %841 = vrot.lane.b32.xlu1 %v3834_v1, %s3604_s22  ;;  %1269 = vrot.lane.b32.xlu0 %v3781_v59, %s3609_s27 }
  0x70   : > { %845 = vrot.lane.b32.xlu1 %v3841_v2, %s3604_s22  ;;  %843 = vrot.lane.b32.xlu0 %v3844_v3, %s3604_s22 }
  0x74   : > { %937 = vrot.lane.b32.xlu1 %v3834_v1, %s3609_s27  ;;  %847 = vrot.lane.b32.xlu0 %v3851_v5, %s3604_s22 }
  0x78   : > { %941 = vrot.lane.b32.xlu1 %v3841_v2, %s3609_s27  ;;  %939 = vrot.lane.b32.xlu0 %v3844_v3, %s3609_s27 }
  0x7c   : > { %653 = vrot.lane.b32.xlu1 %v3688_v14, %s3609_s27  ;;  %943 = vrot.lane.b32.xlu0 %v3851_v5, %s3609_s27 }
  0x80   : > { %657 = vrot.lane.b32.xlu1 %v3699_v18, %s3609_s27  ;;  %655 = vrot.lane.b32.xlu0 %v3683_v13, %s3609_s27 }
  0x84   : > { %559 = vrot.lane.b32.xlu1 %v3683_v13, %s3604_s22  ;;  %659 = vrot.lane.b32.xlu0 %v3691_v15, %s3609_s27 }
  0x87   : > { %v276_v20 = vpop.permute.xlu0 %275 }
  0x88   : > { %563 = vrot.lane.b32.xlu1 %v3691_v15, %s3604_s22  ;;  %561 = vrot.lane.b32.xlu0 %v3699_v18, %s3604_s22  ;;  %v274_v21 = vpop.permute.xlu1 %273 }
  0x8b   : > { %v280_v22 = vpop.permute.xlu0 %279 }
  0x8c   : > { %v278_v23 = vpop.permute.xlu1 %277  ;;  %v301_v25 = vcombine.low %v276_v20, %v280_v22  ;;  %v302_v26 = vcombine.high %v276_v20, %v280_v22 }
  0x8d   : > { %v285_v27 = vcombine.low %v274_v21, %v278_v23  ;;  %v286_v13 = vcombine.high %v274_v21, %v278_v23 }
  0x8e   : > { %v309_v28 = vrot.slane %v301_v25, %v3669_v8  ;;  %v316_v29 = vrot.slane %v302_v26, %v3669_v8 }
  0x8f   : > { %v293_v30 = vrot.slane %v285_v27, %v3669_v8  ;;  %v300_v31 = vrot.slane %v286_v13, %v3669_v8 }
  0x91   : > { %v318_v33 = vcombine.high %v293_v30, %v309_v28  ;;  %v333_v36 = vcombine.low %v300_v31, %v316_v29  ;;  %v317_v11 = vcombine.low %v293_v30, %v309_v28 }
  0x92   : > { %v3899_v18 = vpop.permute.xlu1 %252  ;;  %v3901_v32 = vpop.permute.xlu0 %244 }
  0x93   : > { %5415 = vst [vmem:[#allocation4_spill] sm:$0xff] %v3899_v18  ;;  %5416 = vst [vmem:[#allocation5_spill] sm:$0xff] %v3901_v32  ;;  %v332_v35 = vrot.slane %v318_v33, %v3709_v24  ;;  %v340_v39 = vrot.slane %v333_v36, %v3709_v24  ;;  %v3937_v27 = vrot.slane %v317_v11, %v3709_v24  ;;  %v3953_v36 = vld [vmem:[%s3667_s21 + $0x10] sm:$0xff] }
  0x95   : > { %349 = vrot.lane.b32.xlu0 %v332_v35, %s3606_s24  ;;  %5426 = vst [vmem:[#allocation15_spill] sm:$0xff] %v3937_v27  ;;  %v341_v30 = vcombine.high %v3937_v27, %v5379_v4 }
  0x96   : > { %v3904_v37 = vpop.permute.xlu1 %248  ;;  %v3906_v38 = vpop.permute.xlu0 %240 }
  0x97   : > { %5417 = vst [vmem:[#allocation6_spill] sm:$0xff] %v3904_v37  ;;  %5418 = vst [vmem:[#allocation7_spill] sm:$0xff] %v3906_v38 }
  0x99   : > { %357 = vrot.lane.b32.xlu0 %v340_v39, %s3605_s23 }
  0x9a   : > { %v372_v40 = vpop.permute.xlu1 %371  ;;  %v3910_v41 = vpop.permute.xlu0 %256 }
  0x9b   : > { %5419 = vst [vmem:[#allocation8_spill] sm:$0xff] %v3910_v41 }
  0x9e   : > { %v376_v42 = vpop.permute.xlu1 %375  ;;  %v370_v43 = vpop.permute.xlu0 %369 }
  0x9f   : > { %v397_v45 = vcombine.low %v372_v40, %v376_v42  ;;  %v398_v48 = vcombine.high %v372_v40, %v376_v42  ;;  %v342_v42 = vcombine.high %v332_v35, %v5379_v4 }
  0xa1   : > { %v405_v51 = vrot.slane %v397_v45, %v3669_v8  ;;  %v412_v60 = vrot.slane %v398_v48, %v3669_v8  ;;  %v3965_v48 = vld [vmem:[%s3667_s21 + $0x90] sm:$0xff] }
  0xa2   : > { %v3913_v46 = vpop.permute.xlu1 %533  ;;  %v374_v47 = vpop.permute.xlu0 %373 }
  0xa3   : > { %5420 = vst [vmem:[#allocation9_spill] sm:$0xff] %v3913_v46  ;;  %v381_v49 = vcombine.low %v370_v43, %v374_v47  ;;  %v382_v50 = vcombine.high %v370_v43, %v374_v47  ;;  %v3960_v43 = vrot.slane %v3953_v36, 2 }
  0xa5   : > { %v389_v52 = vrot.slane %v381_v49, %v3669_v8  ;;  %v396_v54 = vrot.slane %v382_v50, %v3669_v8  ;;  %v3969_v49 = vld [vmem:[%s3667_s21 + $0x50] sm:$0xff]  ;;  %v343_v50 = vcombine.high %v340_v39, %v5379_v4 }
  0xa6   : > { %v3918_v57 = vpop.permute.xlu1 %541  ;;  %v3920_v58 = vpop.permute.xlu0 %537 }
  0xa7   : > { %5421 = vst [vmem:[#allocation10_spill] sm:$0xff] %v3918_v57  ;;  %5422 = vst [vmem:[#allocation11_spill] sm:$0xff] %v3920_v58  ;;  %v413_v6 = vcombine.low %v389_v52, %v405_v51  ;;  %v414_v7 = vcombine.high %v389_v52, %v405_v51  ;;  %v429_v21 = vcombine.low %v396_v54, %v412_v60  ;;  %v3975_v51 = vrot.slane %v3965_v48, 2  ;;  %v3986_v60 = vld [vmem:[%s3667_s21 + $0xd0] sm:$0xff] }
  0xa8   : > { %v3983_v54 = vrot.slane %v3969_v49, 2 }
  0xa9   : > { %v428_v16 = vrot.slane %v414_v7, %v3709_v24  ;;  %v3925_v20 = vrot.slane %v413_v6, %v3709_v24  ;;  %v436_v26 = vrot.slane %v429_v21, %v3709_v24  ;;  %v3997_v7 = vrot.slane %v3986_v60, 2 }
  0xaa   : > { %v3927_v22 = vpop.permute.xlu1 %549  ;;  %v3929_v23 = vpop.permute.xlu0 %545  ;;  %v4010_v21 = vrot.slane %v3953_v36, 1 }
  0xab   : > { %5423 = vst [vmem:[#allocation12_spill] sm:$0xff] %v3925_v20  ;;  %5424 = vst [vmem:[#allocation13_spill] sm:$0xff] %v3927_v22  ;;  %445 = vrot.lane.b32.xlu1 %v428_v16, %s3606_s24  ;;  %v437_v25 = vcombine.high %v3925_v20, %v5379_v4  ;;  %v438_v29 = vcombine.high %v428_v16, %v5379_v4  ;;  %v439_v40 = vcombine.high %v436_v26, %v5379_v4 }
  0xac   : > { %5425 = vst [vmem:[#allocation14_spill] sm:$0xff] %v3929_v23  ;;  %5427 = vst [vmem:[#allocation16_spill] sm:$0xff] %v4010_v21 }
  0xad   : > { %441 = vrot.lane.b32.xlu0 %v437_v25, %s3608_s26 }
  0xae   : > { %v3939_v13 = vpop.permute.xlu1 %1735  ;;  %v3941_v28 = vpop.permute.xlu0 %557 }
  0xaf   : > { %453 = vrot.lane.b32.xlu1 %v436_v26, %s3605_s23  ;;  %v4019_v26 = vrot.slane %v3965_v48, 1 }
  0xb1   : > { %449 = vrot.lane.b32.xlu0 %v438_v29, %s3607_s25  ;;  %5428 = vst [vmem:[#allocation17_spill] sm:$0xff] %v4019_v26 }
  0xb2   : > { %v3948_v31 = vpop.permute.xlu1 %1739  ;;  %v3950_v33 = vpop.permute.xlu0 %1737 }
  0xb3   : > { %345 = vrot.lane.b32.xlu1 %v341_v30, %s3608_s26  ;;  %v1747_v4 = vcombine.low %v3939_v13, %v3948_v31  ;;  %v1748_v22 = vcombine.high %v3939_v13, %v3948_v31 }
  0xb5   : > { %457 = vrot.lane.b32.xlu0 %v439_v40, %s3609_s27  ;;  %v4028_v40 = vrot.slane %v3969_v49, 1  ;;  %v1755_v27 = vrot.slane %v1747_v4, %v3669_v8  ;;  %v1762_v4 = vrot.slane %v1748_v22, %v3669_v8 }
  0xb6   : > { %v3962_v45 = vpop.permute.xlu1 %1831  ;;  %v1742_v47 = vpop.permute.xlu0 %1741 }
  0xb7   : > { %353 = vrot.lane.b32.xlu1 %v342_v42, %s3607_s25  ;;  %5429 = vst [vmem:[#allocation18_spill] sm:$0xff] %v4028_v40  ;;  %v1763_v41 = vcombine.low %v3950_v33, %v1742_v47  ;;  %v1764_v34 = vcombine.high %v3950_v33, %v1742_v47 }
  0xb9   : > { %2934 = vrot.lane.b32.xlu0 %v3960_v43, %s3604_s22  ;;  %v1771_v38 = vrot.slane %v1763_v41, %v3669_v8  ;;  %v1778_v13 = vrot.slane %v1764_v34, %v3669_v8 }
  0xba   : > { %v3977_v35 = vpop.permute.xlu1 %1835  ;;  %v3979_v52 = vpop.permute.xlu0 %1833 }
  0xbb   : > { %361 = vrot.lane.b32.xlu1 %v343_v50, %s3609_s27  ;;  %v4037_v50 = vrot.slane %v3986_v60, 1  ;;  %v1843_v23 = vcombine.low %v3962_v45, %v3977_v35  ;;  %v1780_v31 = vcombine.high %v1755_v27, %v1771_v38  ;;  %v1795_v34 = vcombine.low %v1762_v4, %v1778_v13 }
  0xbd   : > { %2938 = vrot.lane.b32.xlu0 %v3975_v51, %s3604_s22  ;;  %5430 = vst [vmem:[#allocation19_spill] sm:$0xff] %v4037_v50  ;;  %v4084_v41 = vrot.slane %v1843_v23, %v3669_v8  ;;  %v1794_v58 = vrot.slane %v1780_v31, %v3709_v24 }
  0xbe   : > { %v3990_v6 = vpop.permute.xlu0 %1837  ;;  %v3992_v39 = vpop.permute.xlu1 %1547 }
  0xbf   : > { %2936 = vrot.lane.b32.xlu1 %v3983_v54, %s3604_s22  ;;  %v1859_v32 = vcombine.low %v3979_v52, %v3990_v6 }
  0xc1   : > { %3030 = vrot.lane.b32.xlu0 %v3960_v43, %s3609_s27  ;;  %v4087_v33 = vrot.slane %v1859_v32, %v3669_v8 }
  0xc2   : > { %v4001_v11 = vpop.permute.xlu0 %1549  ;;  %v4005_v16 = vpop.permute.xlu1 %1551 }
  0xc3   : > { %2940 = vrot.lane.b32.xlu1 %v3997_v7, %s3604_s22  ;;  %v1559_v47 = vcombine.low %v3992_v39, %v4005_v16  ;;  %v1876_v22 = vcombine.high %v4084_v41, %v4087_v33 }
  0xc5   : > { %3034 = vrot.lane.b32.xlu0 %v3975_v51, %s3609_s27  ;;  %v4102_v32 = vrot.slane %v1559_v47, %v3669_v8  ;;  %v1890_v4 = vrot.slane %v1876_v22, %v3709_v24  ;;  %v1560_v22 = vcombine.high %v3992_v39, %v4005_v16 }
  0xc6   : > { %v4012_v25 = vpop.permute.xlu0 %1553  ;;  %v4023_v30 = vpop.permute.xlu1 %1451 }
  0xc7   : > { %3032 = vrot.lane.b32.xlu1 %v3983_v54, %s3609_s27  ;;  %v1575_v44 = vcombine.low %v4001_v11, %v4012_v25 }
  0xc9   : > { %2746 = vrot.lane.b32.xlu0 %v4010_v21, %s3609_s27  ;;  %v4105_v23 = vrot.slane %v1575_v44, %v3669_v8  ;;  %v1802_v44 = vrot.slane %v1795_v34, %v3709_v24 }
  0xca   : > { %v4021_v29 = vpop.permute.xlu0 %1453  ;;  %v4039_v15 = vpop.permute.xlu1 %1455 }
  0xcb   : > { %3036 = vrot.lane.b32.xlu1 %v3997_v7, %s3609_s27 }
  0xcd   : > { %2750 = vrot.lane.b32.xlu0 %v4019_v26, %s3609_s27 }
  0xce   : > { %v4032_v42 = vpop.permute.xlu0 %1457  ;;  %v4049_v9 = vpop.permute.xlu1 %1167 }
  0xcf   : > { %2748 = vrot.lane.b32.xlu1 %v4028_v40, %s3609_s27 }
  0xd1   : > { %2650 = vrot.lane.b32.xlu0 %v4010_v21, %s3604_s22 }
  0xd2   : > { %v4045_v14 = vpop.permute.xlu0 %1169  ;;  %v4062_v20 = vpop.permute.xlu1 %1171 }
  0xd3   : > { %2752 = vrot.lane.b32.xlu1 %v4037_v50, %s3609_s27 }
  0xd5   : > { %2654 = vrot.lane.b32.xlu0 %v4019_v26, %s3604_s22  ;;  %v1860_v26 = vcombine.high %v3979_v52, %v3990_v6  ;;  %v1383_v6 = vcombine.low %v3800_v63, %v3807_v0 }
  0xd6   : > { %v4058_v18 = vpop.permute.xlu0 %1173  ;;  %v4093_v46 = vpop.permute.xlu1 %1263 }
  0xd7   : > { %2652 = vrot.lane.b32.xlu1 %v4028_v40, %s3604_s22 }
  0xd9   : > { %2366 = vrot.lane.b32.xlu0 %v3953_v36, %s3604_s22 }
  0xda   : > { %v4077_v37 = vpop.permute.xlu0 %1265  ;;  %v4112_v57 = vpop.permute.xlu1 %1267 }
  0xdb   : > { %2656 = vrot.lane.b32.xlu1 %v4037_v50, %s3604_s22 }
  0xdd   : > { %2370 = vrot.lane.b32.xlu0 %v3965_v48, %s3604_s22 }
  0xde   : > { %v4125_v47 = vpop.permute.xlu1 %841 }
  0xdf   : > { %2368 = vrot.lane.b32.xlu1 %v3969_v49, %s3604_s22 }
  0xe1   : > { %2462 = vrot.lane.b32.xlu0 %v3953_v36, %s3609_s27  ;;  %v4107_v36 = vpop.permute.xlu0 %1269 }
  0xe3   : > { %2372 = vrot.lane.b32.xlu1 %v3986_v60, %s3604_s22 }
  0xe5   : > { %2466 = vrot.lane.b32.xlu0 %v3965_v48, %s3609_s27  ;;  %v1592_v48 = vcombine.high %v4102_v32, %v4105_v23  ;;  %v4121_v13 = vpop.permute.xlu0 %843 }
  0xe7   : > { %2464 = vrot.lane.b32.xlu1 %v3969_v49, %s3609_s27  ;;  %v5431_v49 = vmov 0.0   ;;  %v1606_v50 = vrot.slane %v1592_v48, %v3709_v24  ;;  %v1779_v48 = vcombine.low %v1755_v27, %v1771_v38  ;;  %v1367_v38 = vcombine.low %v3791_v61, %v3797_v62 }
  0xe8   : > { %v1804_v31 = vcombine.high %v1794_v58, %v5431_v49  ;;  %v1900_v40 = vcombine.high %v1890_v4, %v5431_v49  ;;  %3476 = vmatprep.mubr.msk.f32.mxu1 %vm3610_vm0, %v5431_v49 }
  0xe9   : > { %1811 = vrot.lane.b32.xlu0 %v1794_v58, %s3606_s24  ;;  %v1576_v58 = vcombine.high %v4001_v11, %v4012_v25  ;;  %v4139_v21 = vpop.permute.xlu0 %847  ;;  %v1574_v11 = vrot.slane %v1560_v22, %v3669_v8  ;;  %v4162_v52 = vrot.slane %v1779_v48, %v3709_v24  ;;  %v1875_v25 = vcombine.low %v4084_v41, %v4087_v33 }
  0xea   : > { %v1805_v22 = vcombine.high %v1802_v44, %v5431_v49  ;;  %v4179_v48 = vrot.slane %v1383_v6, %v3669_v8  ;;  %v1463_v41 = vcombine.low %v4023_v30, %v4039_v15  ;;  %v1479_v33 = vcombine.low %v4021_v29, %v4032_v42 }
  0xeb   : > { %2468 = vrot.lane.b32.xlu1 %v3986_v60, %s3609_s27  ;;  %v5432_v60 = vcombine.high %v3854_v10, %v3857_v12  ;;  %v1590_v16 = vrot.slane %v1576_v58, %v3669_v8  ;;  %v1803_v58 = vcombine.high %v4162_v52, %v5431_v49  ;;  %v5433_v6 = vcombine.low %v3878_v17, %v3881_v19 }
  0xec   : > { %v1368_v19 = vcombine.high %v3791_v61, %v3797_v62 }
  0xed   : > { %1819 = vrot.lane.b32.xlu0 %v1802_v44, %s3605_s23  ;;  %v1698_v34 = vrot.slane %v5432_v60, %v3709_v24  ;;  %v4147_v60 = vpop.permute.xlu1 %845 }
  0xee   : > { %v1382_v62 = vrot.slane %v1368_v19, %v3669_v8 }
  0xef   : > { %1815 = vrot.lane.b32.xlu1 %v1804_v31, %s3607_s25  ;;  %v1616_v31 = vcombine.high %v1606_v50, %v5431_v49  ;;  %v1708_v39 = vcombine.high %v1698_v34, %v5431_v49 }
  0xf1   : > { %1911 = vrot.lane.b32.xlu0 %v1900_v40, %s3607_s25  ;;  %v1844_v40 = vcombine.high %v3962_v45, %v3977_v35  ;;  %v1874_v45 = vrot.slane %v1860_v26, %v3669_v8  ;;  %v4158_v35 = vpop.permute.xlu0 %939 }
  0xf3   : > { %1907 = vrot.lane.b32.xlu1 %v1890_v4, %s3606_s24  ;;  %v1858_v27 = vrot.slane %v1844_v40, %v3669_v8  ;;  %v4168_v4 = vpop.permute.xlu1 %937  ;;  %v4190_v40 = vrot.slane %v1875_v25, %v3709_v24  ;;  %v1706_v25 = vrot.slane %v5433_v6, %v3709_v24 }
  0xf5   : > { %1627 = vrot.lane.b32.xlu0 %v1616_v31, %s3607_s25  ;;  %v1891_v26 = vcombine.low %v1858_v27, %v1874_v45  ;;  %v4176_v31 = vrot.slane %v1367_v38, %v3669_v8  ;;  %v4185_v44 = vpop.permute.xlu0 %943  ;;  %v4199_v38 = vrot.slane %v1463_v41, %v3669_v8  ;;  %v4202_v27 = vrot.slane %v1479_v33, %v3669_v8 }
  0xf6   : > { %v1899_v45 = vcombine.high %v4190_v40, %v5431_v49  ;;  %v1384_v33 = vcombine.high %v3800_v63, %v3807_v0  ;;  %v1179_v0 = vcombine.low %v4049_v9, %v4062_v20 }
  0xf7   : > { %1623 = vrot.lane.b32.xlu1 %v1606_v50, %s3606_s24  ;;  %v1607_v50 = vcombine.low %v1574_v11, %v1590_v16  ;;  %v1898_v11 = vrot.slane %v1891_v26, %v3709_v24  ;;  %v1400_v16 = vcombine.high %v4176_v31, %v4179_v48  ;;  %v1591_v26 = vcombine.low %v4102_v32, %v4105_v23 }
  0xf8   : > { %v1398_v63 = vrot.slane %v1384_v33, %v3669_v8 }
  0xf9   : > { %1719 = vrot.lane.b32.xlu0 %v1708_v39, %s3607_s25  ;;  %v4192_v39 = vpop.permute.xlu1 %941  ;;  %v1901_v17 = vcombine.high %v1898_v11, %v5431_v49 }
  0xfa   : > { %v1415_v33 = vcombine.low %v1382_v62, %v1398_v63 }
  0xfb   : > { %1715 = vrot.lane.b32.xlu1 %v1698_v34, %s3606_s24  ;;  %v1614_v34 = vrot.slane %v1607_v50, %v3709_v24  ;;  %v4211_v50 = vpop.permute.xlu0 %655 }
  0xfc   : > { %v1422_v63 = vrot.slane %v1415_v33, %v3709_v24 }
  0xfd   : > { %1823 = vrot.lane.b32.xlu0 %v1805_v22, %s3609_s27  ;;  %v1414_v22 = vrot.slane %v1400_v16, %v3709_v24  ;;  %v4219_v41 = vpop.permute.xlu1 %653  ;;  %v1617_v62 = vcombine.high %v1614_v34, %v5431_v49 }
  0xff   : > { %1807 = vrot.lane.b32.xlu1 %v1803_v58, %s3608_s26  ;;  %v1496_v58 = vcombine.high %v4199_v38, %v4202_v27  ;;  %v4228_v16 = vpop.permute.xlu0 %659  ;;  %v1424_v23 = vcombine.high %v1414_v22, %v5431_v49 }
 0x101   : > { %1631 = vrot.lane.b32.xlu0 %v1614_v34, %s3605_s23  ;;  %v1510_v32 = vrot.slane %v1496_v58, %v3709_v24  ;;  %v4242_v61 = vpop.permute.xlu1 %657  ;;  %v1480_v58 = vcombine.high %v4021_v29, %v4032_v42  ;;  %v1399_v34 = vcombine.low %v4176_v31, %v4179_v48  ;;  %v1495_v31 = vcombine.low %v4199_v38, %v4202_v27 }
 0x102   : > { %v1180_v48 = vcombine.high %v4049_v9, %v4062_v20 }
 0x103   : > { %1915 = vrot.lane.b32.xlu1 %v1898_v11, %s3605_s23  ;;  %v5435_v11 = vcombine.low %v3854_v10, %v3857_v12  ;;  %v1520_v19 = vcombine.high %v1510_v32, %v5431_v49  ;;  %v1494_v42 = vrot.slane %v1480_v58, %v3669_v8  ;;  %v4338_v27 = vrot.slane %v1495_v31, %v3709_v24 }
 0x105   : > { %1903 = vrot.lane.b32.xlu0 %v1899_v45, %s3608_s26  ;;  %v4234_v45 = vrot.slane %v1591_v26, %v3709_v24  ;;  %v4240_v6 = vrot.slane %v5435_v11, %v3709_v24  ;;  %v1464_v26 = vcombine.high %v4023_v30, %v4039_v15  ;;  %v1291_v15 = vcombine.low %v4077_v37, %v4107_v36  ;;  %v4274_v29 = vpop.permute.xlu1 %559 }
 0x107   : > { %1723 = vrot.lane.b32.xlu1 %v1706_v25, %s3605_s23  ;;  %5434 = vst [vmem:[#allocation20_spill] sm:$0xff] %v4234_v45  ;;  %v1615_v10 = vcombine.high %v4234_v45, %v5431_v49  ;;  %v1707_v12 = vcombine.high %v4240_v6, %v5431_v49  ;;  %v1275_v45 = vcombine.low %v4093_v46, %v4112_v57 }
 0x108   : > { %v1478_v30 = vrot.slane %v1464_v26, %v3669_v8  ;;  %v1709_v26 = vcombine.high %v1706_v25, %v5431_v49 }
 0x109   : > { %1431 = vrot.lane.b32.xlu0 %v1414_v22, %s3606_s24  ;;  %v1195_v22 = vcombine.low %v4045_v14, %v4058_v18 }
 0x10a   : > { %v1511_v58 = vcombine.low %v1478_v30, %v1494_v42  ;;  %v4310_v30 = vrot.slane %v1399_v34, %v3709_v24  ;;  %v1196_v42 = vcombine.high %v4045_v14, %v4058_v18  ;;  %v1194_v18 = vrot.slane %v1180_v48, %v3669_v8 }
 0x10b   : > { %1919 = vrot.lane.b32.xlu1 %v1901_v17, %s3609_s27  ;;  %v4260_v17 = vpop.permute.xlu0 %561  ;;  %v4268_v11 = vrot.slane %v1195_v22, %v3669_v8  ;;  %v4287_v22 = vrot.slane %v1275_v45, %v3669_v8  ;;  %v1292_v48 = vcombine.high %v4077_v37, %v4107_v36 }
 0x10c   : > { %v1518_v25 = vrot.slane %v1511_v58, %v3709_v24  ;;  %5439 = vst [vmem:[#allocation24_spill] sm:$0xff] %v4310_v30  ;;  %v1095_v58 = vcombine.low %v3773_v56, %v3781_v59  ;;  %v1423_v14 = vcombine.high %v4310_v30, %v5431_v49  ;;  %v1210_v20 = vrot.slane %v1196_v42, %v3669_v8 }
 0x10d   : > { %1527 = vrot.lane.b32.xlu0 %v1510_v32, %s3606_s24 }
 0x10e   : > { %v1227_v31 = vcombine.low %v1194_v18, %v1210_v20 }
 0x10f   : > { %1435 = vrot.lane.b32.xlu1 %v1424_v23, %s3607_s25  ;;  %v4265_v23 = vrot.slane %v1179_v0, %v3669_v8  ;;  %v4279_v32 = vpop.permute.xlu0 %349 }
 0x110   : > { %5436 = vst [vmem:[#allocation21_spill] sm:$0xff] %v4279_v32 }
 0x111   : > { %1619 = vrot.lane.b32.xlu0 %v1615_v10, %s3608_s26  ;;  %v1212_v0 = vcombine.high %v4265_v23, %v4268_v11  ;;  %v4290_v10 = vrot.slane %v1291_v15, %v3669_v8 }
 0x113   : > { %1531 = vrot.lane.b32.xlu1 %v1520_v19, %s3607_s25  ;;  %v4294_v19 = vpop.permute.xlu1 %563  ;;  %v4301_v45 = vpop.permute.xlu0 %357  ;;  %v1226_v33 = vrot.slane %v1212_v0, %v3709_v24 }
 0x114   : > { %5437 = vst [vmem:[#allocation22_spill] sm:$0xff] %v4301_v45  ;;  %v4344_v45 = vrot.slane %v1095_v58, %v3669_v8  ;;  %v1519_v58 = vcombine.high %v4338_v27, %v5431_v49 }
 0x115   : > { %1711 = vrot.lane.b32.xlu0 %v1707_v12, %s3608_s26  ;;  %v1308_v12 = vcombine.high %v4287_v22, %v4290_v10  ;;  %v1236_v9 = vcombine.high %v1226_v33, %v5431_v49 }
 0x117   : > { %1635 = vrot.lane.b32.xlu1 %v1617_v62, %s3609_s27  ;;  %v1322_v0 = vrot.slane %v1308_v12, %v3709_v24 }
 0x119   : > { %1439 = vrot.lane.b32.xlu0 %v1422_v63, %s3605_s23 }
 0x11b   : > { %1727 = vrot.lane.b32.xlu1 %v1709_v26, %s3609_s27  ;;  %v1079_v26 = vcombine.low %v3764_v53, %v3770_v55 }
 0x11d   : > { %v4305_v15 = vpop.permute.xlu1 %445  ;;  %1243 = vrot.lane.b32.xlu0 %v1226_v33, %s3606_s24  ;;  %v4341_v12 = vrot.slane %v1079_v26, %v3669_v8  ;;  %v1276_v33 = vcombine.high %v4093_v46, %v4112_v57  ;;  %v1306_v57 = vrot.slane %v1292_v48, %v3669_v8  ;;  %v1080_v48 = vcombine.high %v3764_v53, %v3770_v55 }
 0x11e   : > { %5438 = vst [vmem:[#allocation23_spill] sm:$0xff] %v4305_v15 }
 0x11f   : > { %1535 = vrot.lane.b32.xlu1 %v1518_v25, %s3605_s23  ;;  %v4319_v62 = vpop.permute.xlu0 %441  ;;  %v1112_v46 = vcombine.high %v4341_v12, %v4344_v45  ;;  %v1290_v37 = vrot.slane %v1276_v33, %v3669_v8  ;;  %v1521_v33 = vcombine.high %v1518_v25, %v5431_v49 }
 0x120   : > { %5440 = vst [vmem:[#allocation25_spill] sm:$0xff] %v4319_v62 }
 0x121   : > { %v4326_v34 = vpop.permute.xlu1 %453  ;;  %1339 = vrot.lane.b32.xlu0 %v1322_v0, %s3606_s24  ;;  %v1126_v18 = vrot.slane %v1112_v46, %v3709_v24  ;;  %v1323_v20 = vcombine.low %v1290_v37, %v1306_v57 }
 0x122   : > { %5441 = vst [vmem:[#allocation26_spill] sm:$0xff] %v4326_v34  ;;  %v1425_v34 = vcombine.high %v1422_v63, %v5431_v49  ;;  %v1234_v63 = vrot.slane %v1227_v31, %v3709_v24  ;;  %v869_v31 = vcombine.low %v4121_v13, %v4139_v21 }
 0x123   : > { %1247 = vrot.lane.b32.xlu1 %v1236_v9, %s3607_s25  ;;  %v4335_v38 = vpop.permute.xlu0 %449  ;;  %v1332_v9 = vcombine.high %v1322_v0, %v5431_v49  ;;  %v1211_v0 = vcombine.low %v4265_v23, %v4268_v11  ;;  %v1096_v23 = vcombine.high %v3773_v56, %v3781_v59  ;;  %v1307_v11 = vcombine.low %v4287_v22, %v4290_v10 }
 0x124   : > { %5442 = vst [vmem:[#allocation27_spill] sm:$0xff] %v4335_v38  ;;  %v1330_v55 = vrot.slane %v1323_v20, %v3709_v24  ;;  %v1094_v56 = vrot.slane %v1080_v48, %v3669_v8  ;;  %v1136_v22 = vcombine.high %v1126_v18, %v5431_v49  ;;  %v4405_v46 = vrot.slane %v869_v31, %v3669_v8 }
 0x125   : > { %v4350_v42 = vpop.permute.xlu1 %345  ;;  %1427 = vrot.lane.b32.xlu0 %v1423_v14, %s3608_s26  ;;  %v4392_v25 = vrot.slane %v1211_v0, %v3709_v24  ;;  %v1110_v59 = vrot.slane %v1096_v23, %v3669_v8  ;;  %v4413_v0 = vrot.slane %v1307_v11, %v3709_v24  ;;  %v1237_v11 = vcombine.high %v1234_v63, %v5431_v49 }
 0x126   : > { %5443 = vst [vmem:[#allocation28_spill] sm:$0xff] %v4350_v42 }
 0x127   : > { %1343 = vrot.lane.b32.xlu1 %v1332_v9, %s3607_s25  ;;  %v4355_v26 = vpop.permute.xlu0 %457  ;;  %5447 = vst [vmem:[#allocation32_spill] sm:$0xff] %v4392_v25  ;;  %v1235_v57 = vcombine.high %v4392_v25, %v5431_v49  ;;  %5448 = vst [vmem:[#allocation33_spill] sm:$0xff] %v4413_v0  ;;  %v1331_v23 = vcombine.high %v4413_v0, %v5431_v49 }
 0x128   : > { %5444 = vst [vmem:[#allocation29_spill] sm:$0xff] %v4355_v26 }
 0x129   : > { %v4364_v36 = vpop.permute.xlu1 %353  ;;  %1523 = vrot.lane.b32.xlu0 %v1519_v58, %s3608_s26 }
 0x12a   : > { %5445 = vst [vmem:[#allocation30_spill] sm:$0xff] %v4364_v36 }
 0x12b   : > { %1443 = vrot.lane.b32.xlu1 %v1425_v34, %s3609_s27  ;;  %v4370_v14 = vpop.permute.xlu0 %2934  ;;  %v853_v34 = vcombine.low %v4125_v47, %v4147_v60 }
 0x12d   : > { %v4374_v9 = vpop.permute.xlu1 %361  ;;  %1251 = vrot.lane.b32.xlu0 %v1234_v63, %s3605_s23  ;;  %v4402_v10 = vrot.slane %v853_v34, %v3669_v8  ;;  %v854_v63 = vcombine.high %v4125_v47, %v4147_v60  ;;  %v665_v47 = vcombine.low %v4219_v41, %v4242_v61 }
 0x12e   : > { %5446 = vst [vmem:[#allocation31_spill] sm:$0xff] %v4374_v9  ;;  %v757_v9 = vcombine.low %v3834_v1, %v3841_v2 }
 0x12f   : > { %1539 = vrot.lane.b32.xlu1 %v1521_v33, %s3609_s27  ;;  %v4389_v58 = vpop.permute.xlu0 %2938  ;;  %v886_v33 = vcombine.high %v4402_v10, %v4405_v46  ;;  %v4478_v42 = vrot.slane %v665_v47, %v3669_v8 }
 0x130   : > { %v4492_v36 = vrot.slane %v757_v9, %v3669_v8 }
 0x131   : > { %v4394_v53 = vpop.permute.xlu1 %2936  ;;  %1143 = vrot.lane.b32.xlu0 %v1126_v18, %s3606_s24  ;;  %v1127_v18 = vcombine.low %v1094_v56, %v1110_v59  ;;  %v949_v56 = vcombine.low %v4168_v4, %v4192_v39  ;;  %v1111_v59 = vcombine.low %v4341_v12, %v4344_v45  ;;  %v900_v26 = vrot.slane %v886_v33, %v3709_v24 }
 0x132   : > { %v1333_v45 = vcombine.high %v1330_v55, %v5431_v49 }
 0x133   : > { %1347 = vrot.lane.b32.xlu1 %v1330_v55, %s3605_s23  ;;  %v4408_v37 = vpop.permute.xlu0 %3030  ;;  %v1134_v31 = vrot.slane %v1127_v18, %v3709_v24  ;;  %v870_v18 = vcombine.high %v4121_v13, %v4139_v21  ;;  %v4449_v12 = vrot.slane %v949_v56, %v3669_v8  ;;  %v681_v21 = vcombine.low %v4211_v50, %v4228_v16 }
 0x134   : > { %v910_v60 = vcombine.high %v900_v26, %v5431_v49  ;;  %v868_v56 = vrot.slane %v854_v63, %v3669_v8 }
 0x135   : > { %v4415_v20 = vpop.permute.xlu1 %2940  ;;  %1239 = vrot.lane.b32.xlu0 %v1235_v57, %s3608_s26  ;;  %v1137_v55 = vcombine.high %v1134_v31, %v5431_v49 }
 0x137   : > { %1147 = vrot.lane.b32.xlu1 %v1136_v22, %s3607_s25  ;;  %v4421_v48 = vpop.permute.xlu0 %3034  ;;  %v965_v22 = vcombine.low %v4158_v35, %v4185_v44 }
 0x139   : > { %v4425_v34 = vpop.permute.xlu1 %3032  ;;  %1335 = vrot.lane.b32.xlu0 %v1331_v23, %s3608_s26  ;;  %v4455_v33 = vrot.slane %v965_v22, %v3669_v8 }
 0x13b   : > { %1255 = vrot.lane.b32.xlu1 %v1237_v11, %s3609_s27  ;;  %v4437_v57 = vpop.permute.xlu0 %2746  ;;  %v4452_v11 = vrot.slane %v1111_v59, %v3709_v24  ;;  %v884_v59 = vrot.slane %v870_v18, %v3669_v8  ;;  %v982_v62 = vcombine.high %v4449_v12, %v4455_v33 }
 0x13d   : > { %v4444_v23 = vpop.permute.xlu1 %3036  ;;  %1151 = vrot.lane.b32.xlu0 %v1134_v31, %s3605_s23  ;;  %5449 = vst [vmem:[#allocation34_spill] sm:$0xff] %v4452_v11  ;;  %v4481_v31 = vrot.slane %v681_v21, %v3669_v8  ;;  %v1135_v18 = vcombine.high %v4452_v11, %v5431_v49  ;;  %v996_v15 = vrot.slane %v982_v62, %v3709_v24 }
 0x13f   : > { %1351 = vrot.lane.b32.xlu1 %v1333_v45, %s3609_s27  ;;  %v4462_v13 = vpop.permute.xlu0 %2750  ;;  %v773_v45 = vcombine.low %v3844_v3, %v3851_v5  ;;  %v698_v21 = vcombine.high %v4478_v42, %v4481_v31 }
 0x141   : > { %v4468_v22 = vpop.permute.xlu1 %2748  ;;  %921 = vrot.lane.b32.xlu0 %v910_v60, %s3607_s25  ;;  %v901_v60 = vcombine.low %v868_v56, %v884_v59  ;;  %v4495_v47 = vrot.slane %v773_v45, %v3669_v8  ;;  %v885_v59 = vcombine.low %v4402_v10, %v4405_v46  ;;  %v950_v45 = vcombine.high %v4168_v4, %v4192_v39 }
 0x142   : > { %v712_v38 = vrot.slane %v698_v21, %v3709_v24  ;;  %v1006_v10 = vcombine.high %v996_v15, %v5431_v49  ;;  %v682_v21 = vcombine.high %v4211_v50, %v4228_v16  ;;  %v569_v50 = vcombine.low %v3941_v28, %v4260_v17 }
 0x143   : > { %917 = vrot.lane.b32.xlu1 %v900_v26, %s3606_s24  ;;  %v4484_v63 = vpop.permute.xlu0 %2650  ;;  %v790_v9 = vcombine.high %v4492_v36, %v4495_v47  ;;  %v964_v39 = vrot.slane %v950_v45, %v3669_v8 }
 0x145   : > { %v4488_v32 = vpop.permute.xlu1 %2752  ;;  %1155 = vrot.lane.b32.xlu0 %v1137_v55, %s3609_s27  ;;  %v908_v55 = vrot.slane %v901_v60, %v3709_v24  ;;  %v758_v60 = vcombine.high %v3834_v1, %v3841_v2  ;;  %v804_v4 = vrot.slane %v790_v9, %v3709_v24 }
 0x147   : > { %1139 = vrot.lane.b32.xlu1 %v1135_v18, %s3608_s26  ;;  %v4500_v26 = vpop.permute.xlu0 %2654  ;;  %v966_v18 = vcombine.high %v4158_v35, %v4185_v44  ;;  %v774_v35 = vcombine.high %v3844_v3, %v3851_v5  ;;  %v4529_v44 = vrot.slane %v885_v59, %v3709_v24  ;;  %v772_v2 = vrot.slane %v758_v60, %v3669_v8 }
 0x148   : > { %v722_v5 = vcombine.high %v712_v38, %v5431_v49  ;;  %v814_v45 = vcombine.high %v804_v4, %v5431_v49 }
 0x149   : > { %v4503_v56 = vpop.permute.xlu1 %2652  ;;  %1013 = vrot.lane.b32.xlu0 %v996_v15, %s3606_s24  ;;  %5450 = vst [vmem:[#allocation35_spill] sm:$0xff] %v4529_v44  ;;  %v980_v46 = vrot.slane %v966_v18, %v3669_v8  ;;  %v666_v15 = vcombine.high %v4219_v41, %v4242_v61  ;;  %v788_v9 = vrot.slane %v774_v35, %v3669_v8 }
 0x14a   : > { %v909_v59 = vcombine.high %v4529_v44, %v5431_v49  ;;  %v585_v41 = vcombine.low %v4274_v29, %v4294_v19  ;;  %v577_v35 = vrot.slane %v569_v50, %v3669_v8 }
 0x14b   : > { %925 = vrot.lane.b32.xlu1 %v908_v55, %s3605_s23  ;;  %v4516_v62 = vpop.permute.xlu0 %2366  ;;  %v997_v18 = vcombine.low %v964_v39, %v980_v46  ;;  %v680_v61 = vrot.slane %v666_v15, %v3669_v8  ;;  %v981_v15 = vcombine.low %v4449_v12, %v4455_v33 }
 0x14d   : > { %v4521_v11 = vpop.permute.xlu1 %2656  ;;  %729 = vrot.lane.b32.xlu0 %v712_v38, %s3606_s24  ;;  %v696_v38 = vrot.slane %v682_v21, %v3669_v8  ;;  %v1004_v46 = vrot.slane %v997_v18, %v3709_v24  ;;  %v4584_v33 = vrot.slane %v981_v15, %v3709_v24 }
 0x14f   : > { %1017 = vrot.lane.b32.xlu1 %v1006_v10, %s3607_s25  ;;  %v4534_v1 = vpop.permute.xlu0 %2370  ;;  %v805_v10 = vcombine.low %v772_v2, %v788_v9  ;;  %v911_v2 = vcombine.high %v908_v55, %v5431_v49  ;;  %5453 = vst [vmem:[#allocation38_spill] sm:$0xff] %v4584_v33  ;;  %v1007_v55 = vcombine.high %v1004_v46, %v5431_v49 }
 0x151   : > { %v4541_v3 = vpop.permute.xlu1 %2368  ;;  %821 = vrot.lane.b32.xlu0 %v804_v4, %s3606_s24  ;;  %v593_v4 = vrot.slane %v585_v41, %v3669_v8  ;;  %v812_v9 = vrot.slane %v805_v10, %v3709_v24  ;;  %v1005_v10 = vcombine.high %v4584_v33, %v5431_v49 }
 0x153   : > { %733 = vrot.lane.b32.xlu1 %v722_v5, %s3607_s25  ;;  %v4554_v16 = vpop.permute.xlu0 %2462  ;;  %v713_v5 = vcombine.low %v680_v61, %v696_v38  ;;  %v697_v61 = vcombine.low %v4478_v42, %v4481_v31  ;;  %v570_v42 = vcombine.high %v3941_v28, %v4260_v17  ;;  %v815_v28 = vcombine.high %v812_v9, %v5431_v49 }
 0x154   : > { %5451 = vst [vmem:[#allocation36_spill] sm:$0xff] %v4554_v16 }
 0x155   : > { %v4560_v60 = vpop.permute.xlu1 %2372  ;;  %913 = vrot.lane.b32.xlu0 %v909_v59, %s3608_s26  ;;  %v602_v59 = vcombine.high %v577_v35, %v593_v4  ;;  %v720_v12 = vrot.slane %v713_v5, %v3709_v24 }
 0x157   : > { %825 = vrot.lane.b32.xlu1 %v814_v45, %s3607_s25  ;;  %v4566_v39 = vpop.permute.xlu0 %2466  ;;  %v616_v50 = vrot.slane %v602_v59, %v3709_v24  ;;  %v4612_v59 = vrot.slane %v697_v61, %v3709_v24 }
 0x158   : > { %5452 = vst [vmem:[#allocation37_spill] sm:$0xff] %v4566_v39 }
 0x159   : > { %v4571_v21 = vpop.permute.xlu1 %2464  ;;  %1021 = vrot.lane.b32.xlu0 %v1004_v46, %s3605_s23  ;;  %v626_v5 = vcombine.high %v616_v50, %v5431_v49  ;;  %v789_v46 = vcombine.low %v4492_v36, %v4495_v47  ;;  %5454 = vst [vmem:[#allocation39_spill] sm:$0xff] %v4612_v59  ;;  %v584_v47 = vrot.slane %v570_v42, %v3669_v8 }
 0x15b   : > { %929 = vrot.lane.b32.xlu1 %v911_v2, %s3609_s27  ;;  %v4577_v45 = vpop.permute.xlu0 %1811  ;;  %v586_v2 = vcombine.high %v4274_v29, %v4294_v19  ;;  %v723_v29 = vcombine.high %v720_v12, %v5431_v49  ;;  %v4621_v19 = vrot.slane %v789_v46, %v3709_v24 }
 0x15d   : > { %v4579_v41 = vpop.permute.xlu1 %2468  ;;  %829 = vrot.lane.b32.xlu0 %v812_v9, %s3605_s23  ;;  %5455 = vst [vmem:[#allocation40_spill] sm:$0xff] %v4621_v19  ;;  %v600_v17 = vrot.slane %v586_v2, %v3669_v8  ;;  %v2963_v9 = vcombine.high %v4394_v53, %v4415_v20  ;;  %v813_v2 = vcombine.high %v4621_v19, %v5431_v49 }
 0x15f   : > { %737 = vrot.lane.b32.xlu1 %v720_v12, %s3605_s23  ;;  %v4587_v18 = vpop.permute.xlu0 %1819  ;;  %v617_v42 = vcombine.low %v584_v47, %v600_v17 }
 0x161   : > { %v4593_v38 = vpop.permute.xlu1 %1815  ;;  %1025 = vrot.lane.b32.xlu0 %v1007_v55, %s3609_s27  ;;  %v601_v55 = vcombine.low %v577_v35, %v593_v4  ;;  %v2946_v4 = vcombine.low %v4370_v14, %v4389_v58 }
 0x163   : > { %1009 = vrot.lane.b32.xlu1 %v1005_v10, %s3608_s26  ;;  %v4599_v15 = vpop.permute.xlu0 %1911  ;;  %v2962_v10 = vcombine.low %v4394_v53, %v4415_v20  ;;  %v4634_v12 = vrot.slane %v601_v55, %v3709_v24  ;;  %v2947_v55 = vcombine.high %v4370_v14, %v4389_v58  ;;  %v3042_v53 = vcombine.low %v4408_v37, %v4421_v48 }
 0x164   : > { %v2774_v58 = vcombine.low %v4468_v22, %v4488_v32 }
 0x165   : > { %v4608_v31 = vpop.permute.xlu1 %1907  ;;  %637 = vrot.lane.b32.xlu0 %v626_v5, %s3607_s25  ;;  %5456 = vst [vmem:[#allocation41_spill] sm:$0xff] %v4634_v12  ;;  %v4639_v61 = vrot.slane %v2962_v10, %v3669_v8  ;;  %v3058_v5 = vcombine.low %v4425_v34, %v4444_v23  ;;  %v625_v10 = vcombine.high %v4634_v12, %v5431_v49 }
 0x166   : > { %v4677_v12 = vrot.slane %v3042_v53, %v3669_v8  ;;  %v4688_v33 = vrot.slane %v2774_v58, %v3669_v8 }
 0x167   : > { %633 = vrot.lane.b32.xlu1 %v616_v50, %s3606_s24  ;;  %v4617_v36 = vpop.permute.xlu0 %1627  ;;  %v721_v50 = vcombine.high %v4612_v59, %v5431_v49  ;;  %v4664_v14 = vrot.slane %v3058_v5, %v3669_v8  ;;  %v2758_v5 = vcombine.low %v4437_v57, %v4462_v13 }
 0x169   : > { %v4628_v35 = vpop.permute.xlu1 %1623  ;;  %741 = vrot.lane.b32.xlu0 %v723_v29, %s3609_s27  ;;  %v4651_v29 = vrot.slane %v2946_v4, %v3669_v8  ;;  %v2866_v4 = vcombine.low %v3983_v54, %v3997_v7  ;;  %v3075_v44 = vcombine.high %v4677_v12, %v4664_v14  ;;  %v4695_v25 = vrot.slane %v2758_v5, %v3669_v8 }
 0x16b   : > { %725 = vrot.lane.b32.xlu1 %v721_v50, %s3608_s26  ;;  %v4644_v46 = vpop.permute.xlu0 %1719  ;;  %v2977_v50 = vrot.slane %v2963_v9, %v3669_v8  ;;  %v2979_v17 = vcombine.high %v4651_v29, %v4639_v61  ;;  %v2961_v9 = vrot.slane %v2947_v55, %v3669_v8  ;;  %v2791_v58 = vcombine.high %v4695_v25, %v4688_v33 }
 0x16c   : > { %v3089_v5 = vrot.slane %v3075_v44, %v3709_v24  ;;  %v1924_v44 = vsel %vm263_vm1, %v4608_v31, %v4599_v15  ;;  %v2775_v15 = vcombine.high %v4468_v22, %v4488_v32  ;;  %v2978_v32 = vcombine.low %v4651_v29, %v4639_v61  ;;  %v5457_v29 = vld [vmem:[#allocation17_spill] sm:$0xff] }
 0x16d   : > { %v4655_v20 = vpop.permute.xlu1 %1715  ;;  %833 = vrot.lane.b32.xlu0 %v815_v28, %s3609_s27  ;;  %v2850_v28 = vcombine.low %v3960_v43, %v3975_v51  ;;  %v2994_v19 = vcombine.low %v2961_v9, %v2977_v50  ;;  %v2993_v53 = vrot.slane %v2979_v17, %v3709_v24  ;;  %v4703_v50 = vrot.slane %v2866_v4, %v3669_v8 }
 0x16e   : > { %v2759_v22 = vcombine.high %v4437_v57, %v4462_v13  ;;  %v2789_v61 = vrot.slane %v2775_v15, %v3669_v8  ;;  %v3074_v15 = vcombine.low %v4677_v12, %v4664_v14 }
 0x16f   : > { %817 = vrot.lane.b32.xlu1 %v813_v2, %s3608_s26  ;;  %v4669_v47 = vpop.permute.xlu0 %1823  ;;  %v624_v2 = vrot.slane %v617_v42, %v3709_v24  ;;  %v3001_v9 = vrot.slane %v2994_v19, %v3709_v24  ;;  %v2805_v19 = vrot.slane %v2791_v58, %v3709_v24 }
 0x171   : > { %v4681_v59 = vpop.permute.xlu1 %1807  ;;  %629 = vrot.lane.b32.xlu0 %v625_v10, %s3608_s26  ;;  %v627_v42 = vcombine.high %v624_v2, %v5431_v49  ;;  %v4700_v10 = vrot.slane %v2850_v28, %v3669_v8  ;;  %v3003_v28 = vcombine.high %v2993_v53, %v5431_v49 }
 0x173   : > { %641 = vrot.lane.b32.xlu1 %v624_v2, %s3605_s23  ;;  %v4691_v55 = vpop.permute.xlu0 %1631  ;;  %v2883_v4 = vcombine.high %v4700_v10, %v4703_v50 }
 0x175   : > { %v1916_v0 = vpop.permute.xlu1 %1915  ;;  %3010 = vrot.lane.b32.xlu0 %v2993_v53, %s3606_s24 }
 0x176   : > { %v1925_v16 = vsel %vm265_vm3, %v1924_v44, %v1916_v0  ;;  %v5459_v44 = vld [vmem:[#allocation19_spill] sm:$0xff] }
 0x177   : > { %645 = vrot.lane.b32.xlu1 %v627_v42, %s3609_s27  ;;  %v1904_v17 = vpop.permute.xlu0 %1903  ;;  %v3099_v42 = vcombine.high %v3089_v5, %v5431_v49 }
 0x178   : > { %v1922_v53 = vsel %vm259_vm2, %v4190_v40, %v1904_v17  ;;  %v2815_v17 = vcombine.high %v2805_v19, %v5431_v49 }
 0x179   : > { %v4710_v30 = vpop.permute.xlu1 %1723  ;;  %3018 = vrot.lane.b32.xlu0 %v3001_v9, %s3605_s23  ;;  %v1923_v0 = vsel %vm261_vm6, %v1922_v53, %v4608_v31  ;;  %v3043_v31 = vcombine.high %v4408_v37, %v4421_v48  ;;  %v5460_v53 = vld [vmem:[#allocation18_spill] sm:$0xff]  ;;  %v2773_v48 = vrot.slane %v2759_v22, %v3669_v8  ;;  %v1826_v22 = vsel %vm259_vm2, %v4162_v52, %v4681_v59 }
 0x17a   : > { %v2582_v37 = vcombine.low %v5460_v53, %v5459_v44 }
 0x17b   : > { %3014 = vrot.lane.b32.xlu1 %v3003_v28, %s3607_s25  ;;  %v4717_v2 = vpop.permute.xlu0 %1431  ;;  %v2897_v28 = vrot.slane %v2883_v4, %v3709_v24  ;;  %v3059_v4 = vcombine.high %v4425_v34, %v4444_v23  ;;  %v2851_v34 = vcombine.high %v3960_v43, %v3975_v51  ;;  %v2867_v23 = vcombine.high %v3983_v54, %v3997_v7 }
 0x17c   : > { %v4772_v51 = vrot.slane %v2978_v32, %v3709_v24  ;;  %v3057_v54 = vrot.slane %v3043_v31, %v3669_v8  ;;  %v1828_v7 = vsel %vm263_vm1, %v4577_v45, %v4593_v38  ;;  %v2678_v31 = vcombine.low %v4503_v56, %v4521_v11 }
 0x17d   : > { %v1920_v39 = vpop.permute.xlu1 %1919  ;;  %3110 = vrot.lane.b32.xlu0 %v3099_v42, %s3607_s25  ;;  %v3073_v13 = vrot.slane %v3059_v4, %v3669_v8  ;;  %v3004_v4 = vcombine.high %v3001_v9, %v5431_v49  ;;  %v1829_v12 = vsel %vm265_vm3, %v1828_v7, %v4587_v18  ;;  %v1827_v18 = vsel %vm261_vm6, %v1826_v22, %v4577_v45 }
 0x17e   : > { %3467 = vmatpush3.msk.msra.mxu1 %vm1065_vm5, %v1920_v39  ;;  %v1926_v58 = vsel %vm267_vm4, %v1925_v16, %v1920_v39  ;;  %v2907_v39 = vcombine.high %v2897_v28, %v5431_v49  ;;  %v3002_v9 = vcombine.high %v4772_v51, %v5431_v49 }
 0x17f   : > { %3106 = vrot.lane.b32.xlu1 %v3089_v5, %s3606_s24  ;;  %3429 = vmatprep.subr.msk.mxu0 %vm1065_vm5, %v1926_v58  ;;  %v4735_v40 = vpop.permute.xlu0 %1527  ;;  %v5458_v5 = vld [vmem:[#allocation16_spill] sm:$0xff]  ;;  %v2881_v58 = vrot.slane %v2867_v23, %v3669_v8  ;;  %v3090_v32 = vcombine.low %v3057_v54, %v3073_v13  ;;  %v1955_v13 = vrot.slane %v4669_v47, 4 }
 0x180   : > { %3430 = vmatpush1.msk.msra.mxu0 %vm1065_vm5, %v1923_v0  ;;  %3468 = vmatprep.subr.mxu1 %v5431_v49  ;;  %v2566_v42 = vcombine.low %v5458_v5, %v5457_v29  ;;  %v2806_v0 = vcombine.low %v2773_v48, %v2789_v61  ;;  %v4815_v61 = vrot.slane %v3074_v15, %v3709_v24 }
 0x181   : > { %v4748_v16 = vpop.permute.xlu1 %1435  ;;  %2826 = vrot.lane.b32.xlu0 %v2815_v17, %s3607_s25 }
 0x182   : > { %v4788_v38 = vrot.slane %v2566_v42, %v3669_v8  ;;  %v4812_v23 = vrot.slane %v2806_v0, %v3709_v24  ;;  %v3097_v42 = vrot.slane %v3090_v32, %v3709_v24  ;;  %v4836_v0 = vrot.slane %v2678_v31, %v3669_v8 }
 0x183   : > { %2822 = vrot.lane.b32.xlu1 %v2805_v19, %s3606_s24  ;;  %v4760_v57 = vpop.permute.xlu0 %1619  ;;  %v2865_v19 = vrot.slane %v2851_v34, %v3669_v8 }
 0x185   : > { %v4768_v43 = vpop.permute.xlu1 %1531  ;;  %2918 = vrot.lane.b32.xlu0 %v2907_v39, %s3607_s25  ;;  %v4791_v39 = vrot.slane %v2582_v37, %v3669_v8  ;;  %v2898_v59 = vcombine.low %v2865_v19, %v2881_v58  ;;  %v2662_v37 = vcombine.low %v4484_v63, %v4500_v26 }
 0x187   : > { %2914 = vrot.lane.b32.xlu1 %v2897_v28, %s3606_s24  ;;  %v1712_v17 = vpop.permute.xlu0 %1711  ;;  %v1830_v28 = vsel %vm267_vm4, %v1829_v12, %v4669_v47  ;;  %v2599_v45 = vcombine.high %v4788_v38, %v4791_v39  ;;  %v1953_v47 = vrot.slane %v1827_v18, 4  ;;  %v2905_v15 = vrot.slane %v2898_v59, %v3709_v24 }
 0x188   : > { %v1730_v52 = vsel %vm259_vm2, %v4240_v6, %v1712_v17  ;;  %v1732_v6 = vsel %vm263_vm1, %v4655_v20, %v4644_v46  ;;  %v1954_v48 = vrot.slane %v1830_v28, 4  ;;  %v4848_v22 = vrot.slane %v2662_v37, %v3669_v8 }
 0x189   : > { %v4795_v14 = vpop.permute.xlu1 %1635  ;;  %3022 = vrot.lane.b32.xlu0 %v3004_v4, %s3609_s27  ;;  %v1733_v54 = vsel %vm265_vm3, %v1732_v6, %v4710_v30  ;;  %v1731_v46 = vsel %vm261_vm6, %v1730_v52, %v4655_v20  ;;  %v3098_v20 = vcombine.high %v4815_v61, %v5431_v49  ;;  %v2613_v32 = vrot.slane %v2599_v45, %v3709_v24 }
 0x18a   : > { %v1968_v4 = vsel %vm1065_vm5, %v1731_v46, %v1953_v47  ;;  %v2583_v28 = vcombine.high %v5460_v53, %v5459_v44  ;;  %v2790_v52 = vcombine.low %v4695_v25, %v4688_v33  ;;  %v2695_v59 = vcombine.high %v4848_v22, %v4836_v0  ;;  %v5461_v47 = vld [vmem:[#allocation20_spill] sm:$0xff] }
 0x18b   : > { %3006 = vrot.lane.b32.xlu1 %v3002_v9, %s3608_s26  ;;  %v4809_v34 = vpop.permute.xlu0 %1439  ;;  %v2567_v9 = vcombine.high %v5458_v5, %v5457_v29  ;;  %v3100_v6 = vcombine.high %v3097_v42, %v5431_v49  ;;  %v2882_v29 = vcombine.low %v4700_v10, %v4703_v50  ;;  %v2623_v53 = vcombine.high %v2613_v32, %v5431_v49 }
 0x18c   : > { %v2597_v25 = vrot.slane %v2583_v28, %v3669_v8  ;;  %v2709_v44 = vrot.slane %v2695_v59, %v3709_v24  ;;  %v1640_v46 = vsel %vm263_vm1, %v4628_v35, %v4617_v36  ;;  %v2663_v36 = vcombine.high %v4484_v63, %v4500_v26 }
 0x18d   : > { %v1728_v7 = vpop.permute.xlu1 %1727  ;;  %2830 = vrot.lane.b32.xlu0 %v4812_v23, %s3605_s23  ;;  %v2581_v5 = vrot.slane %v2567_v9, %v3669_v8  ;;  %v4882_v10 = vrot.slane %v2882_v29, %v3709_v24  ;;  %v2490_v9 = vcombine.low %v4571_v21, %v4579_v41  ;;  %v2816_v26 = vcombine.high %v4812_v23, %v5431_v49 }
 0x18e   : > { %v1734_v19 = vsel %vm267_vm4, %v1733_v54, %v1728_v7  ;;  %v1970_v58 = vsel %vm1065_vm5, %v1728_v7, %v1955_v13  ;;  %v4876_v13 = vrot.slane %v2790_v52, %v3709_v24  ;;  %v2679_v54 = vcombine.high %v4503_v56, %v4521_v11 }
 0x18f   : > { %3114 = vrot.lane.b32.xlu1 %v3097_v42, %s3605_s23  ;;  %3469 = vmatpush3.msra.mxu1 %v1970_v58  ;;  %v4839_v30 = vpop.permute.xlu0 %1243  ;;  %v1969_v17 = vsel %vm1065_vm5, %v1734_v19, %v1954_v48  ;;  %v2614_v50 = vcombine.low %v2581_v5, %v2597_v25  ;;  %v2394_v42 = vcombine.low %v4541_v3, %v4560_v60  ;;  %v1947_v59 = vrot.slane %v4795_v14, 4 }
 0x190   : > { %2009 = vmatprep.subr.mxu0 %v1969_v17  ;;  %3470 = vmatprep.subr.mxu1 %v5431_v49  ;;  %v2814_v48 = vcombine.high %v4876_v13, %v5431_v49  ;;  %v2378_v7 = vcombine.low %v4516_v62, %v4534_v1  ;;  %v1638_v19 = vsel %vm259_vm2, %v5461_v47, %v4760_v57 }
 0x191   : > { %v1536_v12 = vpop.permute.xlu1 %1535  ;;  %3102 = vrot.lane.b32.xlu0 %v3098_v20, %s3608_s26  ;;  %2010 = vmatpush1.msra.mxu0 %v1968_v4  ;;  %v1641_v58 = vsel %vm265_vm3, %v1640_v46, %v4691_v55  ;;  %v2719_v11 = vcombine.high %v2709_v44, %v5431_v49  ;;  %v2906_v56 = vcombine.high %v4882_v10, %v5431_v49 }
 0x192   : > { %v4908_v20 = vrot.slane %v2614_v50, %v3709_v24  ;;  %v1642_v57 = vsel %vm267_vm4, %v1641_v58, %v4795_v14  ;;  %v2908_v4 = vcombine.high %v2905_v15, %v5431_v49  ;;  %v1639_v28 = vsel %vm261_vm6, %v1638_v19, %v4628_v35  ;;  %v5463_v35 = vld [vmem:[#allocation36_spill] sm:$0xff] }
 0x193   : > { %2922 = vrot.lane.b32.xlu1 %v2905_v15, %s3605_s23  ;;  %v4860_v31 = vpop.permute.xlu0 %1339  ;;  %v4931_v15 = vrot.slane %v2378_v7, %v3669_v8  ;;  %v1544_v52 = vsel %vm263_vm1, %v4735_v40, %v4768_v43  ;;  %v1946_v5 = vrot.slane %v1642_v57, 4  ;;  %v1945_v50 = vrot.slane %v1639_v28, 4  ;;  %v4965_v19 = vld [vmem:[%s3667_s21 + $0x10] sm:$0xff] }
 0x194   : > { %v1545_v25 = vsel %vm265_vm3, %v1544_v52, %v1536_v12  ;;  %v4949_v12 = vrot.slane %v2490_v9, %v3669_v8  ;;  %v2598_v47 = vcombine.low %v4788_v38, %v4791_v39  ;;  %v4968_v58 = vld [vmem:[%s3667_s21 + $0x90] sm:$0xff]  ;;  %v2395_v52 = vcombine.high %v4541_v3, %v4560_v60 }
 0x195   : > { %v4862_v18 = vpop.permute.xlu1 %1247  ;;  %2630 = vrot.lane.b32.xlu0 %v2613_v32, %s3606_s24  ;;  %v4918_v32 = vrot.slane %v2394_v42, %v3669_v8 }
 0x197   : > { %3118 = vrot.lane.b32.xlu1 %v3100_v6, %s3609_s27  ;;  %v4871_v33 = vpop.permute.xlu0 %1427  ;;  %v5462_v6 = vld [vmem:[#allocation37_spill] sm:$0xff]  ;;  %v2411_v14 = vcombine.high %v4931_v15, %v4918_v32 }
 0x198   : > { %v2474_v29 = vcombine.low %v5463_v35, %v5462_v6 }
 0x199   : > { %v4878_v45 = vpop.permute.xlu1 %1343  ;;  %2726 = vrot.lane.b32.xlu0 %v2709_v44, %s3606_s24  ;;  %v2425_v9 = vrot.slane %v2411_v14, %v3709_v24 }
 0x19a   : > { %v4958_v7 = vrot.slane %v2474_v29, %v3669_v8 }
 0x19b   : > { %2634 = vrot.lane.b32.xlu1 %v2623_v53, %s3607_s25  ;;  %v1524_v37 = vpop.permute.xlu0 %1523  ;;  %v2677_v53 = vrot.slane %v2663_v36, %v3669_v8  ;;  %v4976_v36 = vld [vmem:[%s3667_s21 + $0xd0] sm:$0xff]  ;;  %v2435_v60 = vcombine.high %v2425_v9, %v5431_v49 }
 0x19c   : > { %v1542_v55 = vsel %vm259_vm2, %v4338_v27, %v1524_v37  ;;  %v2693_v27 = vrot.slane %v2679_v54, %v3669_v8  ;;  %v2507_v38 = vcombine.high %v4958_v7, %v4949_v12 }
 0x19d   : > { %v4901_v17 = vpop.permute.xlu1 %1443  ;;  %2818 = vrot.lane.b32.xlu0 %v2814_v48, %s3608_s26  ;;  %v1543_v23 = vsel %vm261_vm6, %v1542_v55, %v4735_v40  ;;  %v2694_v55 = vcombine.low %v4848_v22, %v4836_v0 }
 0x19e   : > { %v1965_v48 = vsel %vm1065_vm5, %v1543_v23, %v1945_v50  ;;  %v2710_v54 = vcombine.low %v2677_v53, %v2693_v27  ;;  %v4993_v27 = vrot.slane %v2598_v47, %v3709_v24  ;;  %v2521_v29 = vrot.slane %v2507_v38, %v3709_v24  ;;  %v5465_v50 = vld [vmem:[#allocation33_spill] sm:$0xff] }
 0x19f   : > { %2730 = vrot.lane.b32.xlu1 %v2719_v11, %s3607_s25  ;;  %v4925_v63 = vpop.permute.xlu0 %1251  ;;  %v2278_v11 = vcombine.low %v4965_v19, %v4968_v58  ;;  %v1356_v47 = vsel %vm263_vm1, %v4860_v31, %v4878_v45 }
 0x1a0   : > { %v2622_v23 = vcombine.high %v4993_v27, %v5431_v49  ;;  %v2531_v38 = vcombine.high %v2521_v29, %v5431_v49 }
 0x1a1   : > { %v1540_v44 = vpop.permute.xlu1 %1539  ;;  %2910 = vrot.lane.b32.xlu0 %v2906_v56, %s3608_s26  ;;  %v4973_v56 = vld [vmem:[%s3667_s21 + $0x50] sm:$0xff]  ;;  %v4996_v0 = vrot.slane %v2278_v11, %v3669_v8  ;;  %v1939_v11 = vrot.slane %v4901_v17, 4 }
 0x1a2   : > { %v1546_v42 = vsel %vm267_vm4, %v1545_v25, %v1540_v44  ;;  %v1967_v43 = vsel %vm1065_vm5, %v1540_v44, %v1947_v59  ;;  %v2294_v57 = vcombine.low %v4973_v56, %v4976_v36  ;;  %v1448_v25 = vsel %vm263_vm1, %v4717_v2, %v4748_v16  ;;  %v5464_v44 = vld [vmem:[#allocation24_spill] sm:$0xff] }
 0x1a3   : > { %2834 = vrot.lane.b32.xlu1 %v2816_v26, %s3609_s27  ;;  %3471 = vmatpush3.msra.mxu1 %v1967_v43  ;;  %v4952_v40 = vpop.permute.xlu0 %1143  ;;  %v1966_v37 = vsel %vm1065_vm5, %v1546_v42, %v1946_v5  ;;  %v4990_v26 = vrot.slane %v2710_v54, %v3709_v24  ;;  %v5009_v5 = vrot.slane %v2694_v55, %v3709_v24 }
 0x1a4   : > { %2011 = vmatprep.subr.mxu0 %v1966_v37  ;;  %3472 = vmatprep.subr.mxu1 %v5431_v49  ;;  %v4999_v22 = vrot.slane %v2294_v57, %v3669_v8  ;;  %v2409_v43 = vrot.slane %v2395_v52, %v3669_v8  ;;  %v2475_v54 = vcombine.high %v5463_v35, %v5462_v6 }
 0x1a5   : > { %v1348_v46 = vpop.permute.xlu1 %1347  ;;  %2638 = vrot.lane.b32.xlu0 %v4908_v20, %s3605_s23  ;;  %2012 = vmatpush1.msra.mxu0 %v1965_v48  ;;  %v2718_v48 = vcombine.high %v5009_v5, %v5431_v49 }
 0x1a7   : > { %2926 = vrot.lane.b32.xlu1 %v2908_v4, %s3609_s27  ;;  %v1240_v39 = vpop.permute.xlu0 %1239  ;;  %v2379_v4 = vcombine.high %v4516_v62, %v4534_v1  ;;  %v1446_v62 = vsel %vm259_vm2, %v5464_v44, %v4871_v33  ;;  %v1449_v1 = vsel %vm265_vm3, %v1448_v25, %v4809_v34  ;;  %v2624_v33 = vcombine.high %v4908_v20, %v5431_v49 }
 0x1a8   : > { %v1450_v53 = vsel %vm267_vm4, %v1449_v1, %v4901_v17  ;;  %v2311_v34 = vcombine.high %v4996_v0, %v4999_v22  ;;  %v1447_v14 = vsel %vm261_vm6, %v1446_v62, %v4717_v2  ;;  %v2491_v20 = vcombine.high %v4571_v21, %v4579_v41 }
 0x1a9   : > { %v4986_v28 = vpop.permute.xlu1 %1147  ;;  %2442 = vrot.lane.b32.xlu0 %v2425_v9, %s3606_s24  ;;  %v2393_v42 = vrot.slane %v2379_v4, %v3669_v8  ;;  %v1938_v57 = vrot.slane %v1450_v53, 4  ;;  %v1357_v2 = vsel %vm265_vm3, %v1356_v47, %v1348_v46  ;;  %v1260_v21 = vsel %vm263_vm1, %v4839_v30, %v4862_v18  ;;  %v5466_v4 = vld [vmem:[#allocation32_spill] sm:$0xff] }
 0x1aa   : > { %v1937_v41 = vrot.slane %v1447_v14, 4  ;;  %v1261_v46 = vsel %vm265_vm3, %v1260_v21, %v4925_v63  ;;  %v1258_v52 = vsel %vm259_vm2, %v5466_v4, %v1240_v39  ;;  %v2325_v25 = vrot.slane %v2311_v34, %v3709_v24 }
 0x1ab   : > { %2734 = vrot.lane.b32.xlu1 %v4990_v26, %s3605_s23  ;;  %v1336_v59 = vpop.permute.xlu0 %1335  ;;  %v2426_v35 = vcombine.low %v2393_v42, %v2409_v43  ;;  %v2279_v44 = vcombine.high %v4965_v19, %v4968_v58  ;;  %v2410_v39 = vcombine.low %v4931_v15, %v4918_v32  ;;  %v2489_v62 = vrot.slane %v2475_v54, %v3669_v8  ;;  %v5467_v43 = vld [vmem:[#allocation34_spill] sm:$0xff] }
 0x1ac   : > { %v1354_v16 = vsel %vm259_vm2, %v5465_v50, %v1336_v59  ;;  %v1160_v1 = vsel %vm263_vm1, %v4952_v40, %v4986_v28  ;;  %v2295_v58 = vcombine.high %v4973_v56, %v4976_v36  ;;  %v3428_v28 = vld [vmem:[%s5376_s0 + $0x8] sm:$0xff]  ;;  %v2720_v34 = vcombine.high %v4990_v26, %v5431_v49 }
 0x1ad   : > { %v1256_v3 = vpop.permute.xlu1 %1255  ;;  %2538 = vrot.lane.b32.xlu0 %v2521_v29, %s3606_s24  ;;  %v1355_v6 = vsel %vm261_vm6, %v1354_v16, %v4860_v31  ;;  %v2505_v29 = vrot.slane %v2491_v20, %v3669_v8  ;;  %v2433_v19 = vrot.slane %v2426_v35, %v3709_v24  ;;  %v2506_v56 = vcombine.low %v4958_v7, %v4949_v12 }
 0x1ae   : > { %v1262_v18 = vsel %vm267_vm4, %v1261_v46, %v1256_v3  ;;  %v1962_v59 = vsel %vm1065_vm5, %v1355_v6, %v1937_v41  ;;  %v2293_v7 = vrot.slane %v2279_v44, %v3669_v8  ;;  %v2310_v6 = vcombine.low %v4996_v0, %v4999_v22 }
 0x1af   : > { %2446 = vrot.lane.b32.xlu1 %v2435_v60, %s3607_s25  ;;  %v1152_v37 = vpop.permute.xlu0 %1151  ;;  %v1931_v60 = vrot.slane %v1256_v3, 4  ;;  %v1930_v53 = vrot.slane %v1262_v18, 4  ;;  %v2436_v41 = vcombine.high %v2433_v19, %v5431_v49 }
 0x1b0   : > { %v1161_v50 = vsel %vm265_vm3, %v1160_v1, %v1152_v37  ;;  %v5137_v35 = vrot.slane %v2310_v6, %v3709_v24  ;;  %v5477_v6 = vld [vmem:[#allocation14_spill] sm:$0xff] }
 0x1b1   : > { %v1352_v55 = vpop.permute.xlu1 %1351  ;;  %2626 = vrot.lane.b32.xlu0 %v2622_v23, %s3608_s26  ;;  %v1259_v23 = vsel %vm261_vm6, %v1258_v52, %v4839_v30  ;;  %v2522_v30 = vcombine.low %v2489_v62, %v2505_v29  ;;  %v5468_v62 = vld [vmem:[#allocation38_spill] sm:$0xff] }
 0x1b2   : > { %v1358_v45 = vsel %vm267_vm4, %v1357_v2, %v1352_v55  ;;  %v1964_v17 = vsel %vm1065_vm5, %v1352_v55, %v1939_v11  ;;  %v1929_v42 = vrot.slane %v1259_v23, 4  ;;  %v2335_v11 = vcombine.high %v2325_v25, %v5431_v49 }
 0x1b3   : > { %2542 = vrot.lane.b32.xlu1 %v2531_v38, %s3607_s25  ;;  %3473 = vmatpush3.msra.mxu1 %v1964_v17  ;;  %v5059_v9 = vpop.permute.xlu0 %921  ;;  %v1963_v31 = vsel %vm1065_vm5, %v1358_v45, %v1938_v57  ;;  %v2529_v12 = vrot.slane %v2522_v30, %v3709_v24  ;;  %v5123_v57 = vrot.slane %v2506_v56, %v3709_v24 }
 0x1b4   : > { %2013 = vmatprep.subr.mxu0 %v1963_v31  ;;  %3474 = vmatprep.subr.mxu1 %v5431_v49  ;;  %v2334_v4 = vcombine.high %v5137_v35, %v5431_v49 }
 0x1b5   : > { %v5068_v63 = vpop.permute.xlu1 %917  ;;  %2722 = vrot.lane.b32.xlu0 %v2718_v48, %s3608_s26  ;;  %2014 = vmatpush1.msra.mxu0 %v1962_v59  ;;  %v5105_v48 = vrot.slane %v2410_v39, %v3709_v24  ;;  %v2530_v38 = vcombine.high %v5123_v57, %v5431_v49  ;;  %v2532_v31 = vcombine.high %v2529_v12, %v5431_v49 }
 0x1b7   : > { %2642 = vrot.lane.b32.xlu1 %v2624_v33, %s3609_s27  ;;  %v1156_v16 = vpop.permute.xlu0 %1155  ;;  %v2434_v47 = vcombine.high %v5105_v48, %v5431_v49 }
 0x1b8   : > { %v1162_v32 = vsel %vm267_vm4, %v1161_v50, %v1156_v16  ;;  %v1961_v15 = vsel %vm1065_vm5, %v1156_v16, %v1931_v60  ;;  %v934_v50 = vsel %vm263_vm1, %v5068_v63, %v5059_v9  ;;  %v5470_v9 = vld [vmem:[#allocation10_spill] sm:$0xff] }
 0x1b9   : > { %v1140_v3 = vpop.permute.xlu1 %1139  ;;  %2450 = vrot.lane.b32.xlu0 %v2433_v19, %s3605_s23  ;;  %3475 = vmatpush3.msra.mxu1 %v1961_v15  ;;  %v1960_v33 = vsel %vm1065_vm5, %v1162_v32, %v1930_v53  ;;  %v5469_v32 = vld [vmem:[#allocation35_spill] sm:$0xff] }
 0x1ba   : > { %v1158_v14 = vsel %vm259_vm2, %v5467_v43, %v1140_v3  ;;  %2015 = vmatprep.subr.mxu0 %v1960_v33  ;;  %3479 = vmatprep.subr.mxu1 %v5431_v49 }
 0x1bb   : > { %2738 = vrot.lane.b32.xlu1 %v2720_v34, %s3609_s27  ;;  %v1014_v36 = vpop.permute.xlu0 %1013  ;;  %v1159_v37 = vsel %vm261_vm6, %v1158_v14, %v4952_v40  ;;  %3477 = vmatmul.mubr.msk.f32.vlgmr.msra.gmra.mxu1 %vm1973_vm7, %v3428_v28  ;;  %v2309_v40 = vrot.slane %v2295_v58, %v3669_v8  ;;  %v5471_v14 = vld [vmem:[#allocation11_spill] sm:$0xff] }
 0x1bc   : > { %v1959_v26 = vsel %vm1065_vm5, %v1159_v37, %v1929_v42  ;;  %3489 = vmatprep.mubr.msk.f32.mxu1 %vm3610_vm0, %v5431_v49  ;;  %v554_v56 = vsel %vm263_vm1, %v5471_v14, %v5470_v9 }
 0x1bd   : > { %v926_v54 = vpop.permute.xlu1 %925  ;;  %2342 = vrot.lane.b32.xlu0 %v2325_v25, %s3606_s24  ;;  %2016 = vmatpush1.msra.mxu0 %v1959_v26  ;;  %v2326_v8 = vcombine.low %v2293_v7, %v2309_v40  ;;  %v5473_v7 = vld [vmem:[#allocation3_spill] sm:$0xff] }
 0x1be   : > { %3431 = vmatmul.mubr.msk.f32.vlgmr.msra.gmra.mxu0 %vm1973_vm7, %v3428_v28  ;;  %v935_v16 = vsel %vm265_vm3, %v934_v50, %v926_v54 }
 0x1bf   : > { %2546 = vrot.lane.b32.xlu1 %v2529_v12, %s3605_s23  ;;  %v5117_v20 = vpop.permute.xlu0 %729  ;;  %2201 = vmatprep.mubr.f32.mxu0 %v5431_v49  ;;  %v2333_v45 = vrot.slane %v2326_v8, %v3709_v24  ;;  %v5472_v12 = vld [vmem:[#allocation9_spill] sm:$0xff] }
 0x1c0   : > { %v5476_v8 = vld [vmem:[#allocation5_spill] sm:$0xff] }
 0x1c1   : > { %v1018_v2 = vpop.permute.xlu1 %1017  ;;  %2438 = vrot.lane.b32.xlu0 %v2434_v47, %s3608_s26  ;;  %v2336_v0 = vcombine.high %v2333_v45, %v5431_v49  ;;  %v5474_v47 = vld [vmem:[#allocation40_spill] sm:$0xff] }
 0x1c2   : > { %v1030_v59 = vsel %vm263_vm1, %v1014_v36, %v1018_v2  ;;  %v5475_v2 = vld [vmem:[#allocation6_spill] sm:$0xff] }
 0x1c3   : > { %2346 = vrot.lane.b32.xlu1 %v2335_v11, %s3607_s25  ;;  %v822_v55 = vpop.permute.xlu0 %821 }
 0x1c5   : > { %v734_v21 = vpop.permute.xlu1 %733  ;;  %2534 = vrot.lane.b32.xlu0 %v2530_v38, %s3608_s26  ;;  %v264_v38 = vsel %vm263_vm1, %v5476_v8, %v5475_v2 }
 0x1c7   : > { %2454 = vrot.lane.b32.xlu1 %v2436_v41, %s3609_s27  ;;  %v914_v17 = vpop.permute.xlu0 %913  ;;  %v555_v41 = vsel %vm265_vm3, %v554_v56, %v5477_v6 }
 0x1c8   : > { %v932_v15 = vsel %vm259_vm2, %v5469_v32, %v914_v17  ;;  %v5479_v17 = vld [vmem:[#allocation23_spill] sm:$0xff] }
 0x1c9   : > { %v826_v46 = vpop.permute.xlu1 %825  ;;  %2350 = vrot.lane.b32.xlu0 %v2333_v45, %s3605_s23  ;;  %v933_v33 = vsel %vm261_vm6, %v932_v15, %v5068_v63  ;;  %v552_v63 = vsel %vm259_vm2, %v5473_v7, %v5472_v12  ;;  %v5478_v45 = vld [vmem:[#allocation27_spill] sm:$0xff] }
 0x1ca   : > { %v838_v30 = vsel %vm263_vm1, %v822_v55, %v826_v46  ;;  %v1059_v40 = vrot.slane %v933_v33, 4  ;;  %v462_v46 = vsel %vm263_vm1, %v5479_v17, %v5478_v45  ;;  %v5489_v33 = vld [vmem:[#allocation25_spill] sm:$0xff] }
 0x1cb   : > { %2550 = vrot.lane.b32.xlu1 %v2532_v31, %s3609_s27  ;;  %v1022_v22 = vpop.permute.xlu0 %1021 }
 0x1cc   : > { %v1031_v29 = vsel %vm265_vm3, %v1030_v59, %v1022_v22  ;;  %v5480_v22 = vld [vmem:[#allocation30_spill] sm:$0xff]  ;;  %v5482_v59 = vld [vmem:[#allocation39_spill] sm:$0xff] }
 0x1cd   : > { %v930_v52 = vpop.permute.xlu1 %929  ;;  %2354 = vrot.lane.b32.xlu0 %v2336_v0, %s3609_s27 }
 0x1ce   : > { %v936_v58 = vsel %vm267_vm4, %v935_v16, %v930_v52  ;;  %v1061_v3 = vrot.slane %v930_v52, 4 }
 0x1cf   : > { %2338 = vrot.lane.b32.xlu1 %v2334_v4, %s3608_s26  ;;  %v830_v24 = vpop.permute.xlu0 %829  ;;  %v1060_v34 = vrot.slane %v936_v58, 4  ;;  %v5481_v4 = vld [vmem:[#allocation21_spill] sm:$0xff] }
 0x1d0   : > { %v839_v42 = vsel %vm265_vm3, %v838_v30, %v830_v24  ;;  %v366_v52 = vsel %vm263_vm1, %v5481_v4, %v5480_v22  ;;  %v746_v24 = vsel %vm263_vm1, %v5117_v20, %v734_v21  ;;  %v5487_v21 = vld [vmem:[#allocation13_spill] sm:$0xff] }
 0x1d1   : > { %v738_v18 = vpop.permute.xlu1 %737  ;;  %v1045_v15 = vrot.slane %v5487_v21, 4  ;;  %v556_v58 = vsel %vm267_vm4, %v555_v41, %v5487_v21  ;;  %v5488_v30 = vld [vmem:[#allocation41_spill] sm:$0xff] }
 0x1d2   : > { %v747_v16 = vsel %vm265_vm3, %v746_v24, %v738_v18  ;;  %v5492_v18 = vld [vmem:[#allocation22_spill] sm:$0xff] }
 0x1d3   : > { %v1026_v25 = vpop.permute.xlu0 %1025 }
 0x1d4   : > { %v1032_v44 = vsel %vm267_vm4, %v1031_v29, %v1026_v25  ;;  %3480 = vmatpush3.msk.msra.mxu1 %vm1065_vm5, %v1026_v25 }
 0x1d5   : > { %v1010_v39 = vpop.permute.xlu1 %1009  ;;  %3434 = vmatprep.subr.msk.mxu0 %vm1065_vm5, %v1032_v44  ;;  %3481 = vmatprep.subr.mxu1 %v5431_v49  ;;  %v5483_v44 = vld [vmem:[#allocation7_spill] sm:$0xff] }
 0x1d6   : > { %v1028_v1 = vsel %vm259_vm2, %v5468_v62, %v1010_v39  ;;  %v5484_v39 = vld [vmem:[#allocation2_spill] sm:$0xff] }
 0x1d7   : > { %v1029_v60 = vsel %vm261_vm6, %v1028_v1, %v1014_v36  ;;  %v638_v23 = vpop.permute.xlu0 %637  ;;  %v260_v62 = vsel %vm259_vm2, %v5484_v39, %v5483_v44  ;;  %v5485_v1 = vld [vmem:[#allocation28_spill] sm:$0xff] }
 0x1d8   : > { %3435 = vmatpush1.msk.msra.mxu0 %vm1065_vm5, %v1029_v60  ;;  %v5486_v60 = vld [vmem:[#allocation15_spill] sm:$0xff]  ;;  %v5496_v44 = vld [vmem:[#allocation8_spill] sm:$0xff] }
 0x1d9   : > { %v634_v53 = vpop.permute.xlu1 %633  ;;  %v364_v50 = vsel %vm259_vm2, %v5486_v60, %v5485_v1  ;;  %v262_v60 = vsel %vm261_vm6, %v260_v62, %v5476_v8 }
 0x1da   : > { %v650_v12 = vsel %vm263_vm1, %v634_v53, %v638_v23 }
 0x1db   : > { %v742_v19 = vpop.permute.xlu0 %741 }
 0x1dc   : > { %v1053_v7 = vrot.slane %v742_v19, 4 }
 0x1dd   : > { %v726_v28 = vpop.permute.xlu1 %725 }
 0x1de   : > { %v744_v29 = vsel %vm259_vm2, %v5482_v59, %v726_v28  ;;  %v748_v28 = vsel %vm267_vm4, %v747_v16, %v742_v19  ;;  %v5495_v59 = vld [vmem:[#allocation4_spill] sm:$0xff] }
 0x1df   : > { %v834_v43 = vpop.permute.xlu0 %833  ;;  %v745_v56 = vsel %vm261_vm6, %v744_v29, %v5117_v20  ;;  %v266_v29 = vsel %vm265_vm3, %v264_v38, %v5495_v59  ;;  %v1078_v38 = vld [vmem:[%s5376_s0] sm:$0xff] }
 0x1e0   : > { %v840_v36 = vsel %vm267_vm4, %v839_v42, %v834_v43  ;;  %v1077_v37 = vsel %vm1065_vm5, %v834_v43, %v1061_v3  ;;  %v5491_v43 = vld [vmem:[#allocation26_spill] sm:$0xff]  ;;  %v1051_v41 = vrot.slane %v745_v56, 4  ;;  %v268_v39 = vsel %vm267_vm4, %v266_v29, %v5496_v44 }
 0x1e1   : > { %v818_v26 = vpop.permute.xlu1 %817  ;;  %3482 = vmatpush3.msra.mxu1 %v1077_v37  ;;  %v1076_v54 = vsel %vm1065_vm5, %v840_v36, %v1060_v34  ;;  %v5490_v34 = vld [vmem:[#allocation12_spill] sm:$0xff]  ;;  %v463_v9 = vsel %vm265_vm3, %v462_v46, %v5491_v43  ;;  %v365_v37 = vsel %vm261_vm6, %v364_v50, %v5481_v4 }
 0x1e2   : > { %v836_v11 = vsel %vm259_vm2, %v5474_v47, %v818_v26  ;;  %2161 = vmatprep.subr.mxu0 %v1076_v54  ;;  %3483 = vmatprep.subr.mxu1 %v5431_v49  ;;  %v460_v42 = vsel %vm259_vm2, %v5490_v34, %v5489_v33  ;;  %v5493_v26 = vld [vmem:[#allocation31_spill] sm:$0xff]  ;;  %v1052_v47 = vrot.slane %v748_v28, 4  ;;  %v1035_v4 = vrot.slane %v365_v37, 4 }
 0x1e3   : > { %v837_v31 = vsel %vm261_vm6, %v836_v11, %v822_v55  ;;  %v630_v0 = vpop.permute.xlu0 %629  ;;  %v553_v55 = vsel %vm261_vm6, %v552_v63, %v5471_v14  ;;  %v367_v14 = vsel %vm265_vm3, %v366_v52, %v5492_v18  ;;  %v5494_v63 = vld [vmem:[#allocation29_spill] sm:$0xff]  ;;  %v1037_v6 = vrot.slane %v5493_v26, 4 }
 0x1e4   : > { %v1075_v25 = vsel %vm1065_vm5, %v837_v31, %v1059_v40  ;;  %v648_v3 = vsel %vm259_vm2, %v5488_v30, %v630_v0  ;;  %v368_v54 = vsel %vm267_vm4, %v367_v14, %v5493_v26  ;;  %v464_v40 = vsel %vm267_vm4, %v463_v9, %v5494_v63 }
 0x1e5   : > { %v642_v32 = vpop.permute.xlu1 %641  ;;  %2162 = vmatpush1.msra.mxu0 %v1075_v25  ;;  %v649_v11 = vsel %vm261_vm6, %v648_v3, %v634_v53  ;;  %v1044_v31 = vrot.slane %v556_v58, 4  ;;  %v461_v23 = vsel %vm261_vm6, %v460_v42, %v5479_v17  ;;  %v1036_v19 = vrot.slane %v368_v54, 4 }
 0x1e6   : > { %v651_v2 = vsel %vm265_vm3, %v650_v12, %v642_v32  ;;  %v1043_v53 = vrot.slane %v553_v55, 4  ;;  %v1072_v52 = vsel %vm1065_vm5, %v649_v11, %v1051_v41  ;;  %v1071_v24 = vsel %vm1065_vm5, %v5494_v63, %v1045_v15 }
 0x1e7   : > { %v5221_v36 = vpop.permute.xlu0 %3010  ;;  %v1070_v17 = vsel %vm1065_vm5, %v464_v40, %v1044_v31  ;;  %v1068_v1 = vsel %vm1065_vm5, %v5496_v44, %v1037_v6  ;;  %v1067_v16 = vsel %vm1065_vm5, %v268_v39, %v1036_v19  ;;  %v1066_v32 = vsel %vm1065_vm5, %v262_v60, %v1035_v4 }
 0x1e8   : > { %v1069_v55 = vsel %vm1065_vm5, %v461_v23, %v1043_v53 }
 0x1e9   : > { %v646_v20 = vpop.permute.xlu1 %645 }
 0x1ea   : > { %v652_v45 = vsel %vm267_vm4, %v651_v2, %v646_v20  ;;  %v1074_v46 = vsel %vm1065_vm5, %v646_v20, %v1053_v7 }
 0x1eb   : > { %3484 = vmatpush3.msra.mxu1 %v1074_v46  ;;  %v3019_v0 = vpop.permute.xlu0 %3018  ;;  %v1073_v22 = vsel %vm1065_vm5, %v652_v45, %v1052_v47 }
 0x1ec   : > { %2163 = vmatprep.subr.mxu0 %v1073_v22  ;;  %3485 = vmatprep.subr.mxu1 %v5431_v49 }
 0x1ed   : > { %v3015_v25 = vpop.permute.xlu1 %3014  ;;  %2164 = vmatpush1.msra.mxu0 %v1072_v52  ;;  %3486 = vmatpush3.msra.mxu1 %v1071_v24 }
 0x1ee   : > { %2165 = vmatprep.subr.mxu0 %v1070_v17  ;;  %3487 = vmatprep.subr.mxu1 %v5431_v49  ;;  %v3027_v63 = vsel %vm263_vm1, %v5221_v36, %v3015_v25 }
 0x1ef   : > { %2166 = vmatpush1.msra.mxu0 %v1069_v55  ;;  %3488 = vmatpush3.msra.mxu1 %v1068_v1  ;;  %v3111_v50 = vpop.permute.xlu0 %3110  ;;  %v3028_v11 = vsel %vm265_vm3, %v3027_v63, %v3019_v0 }
 0x1f0   : > { %2167 = vmatprep.subr.mxu0 %v1067_v16  ;;  %3492 = vmatprep.subr.mxu1 %v5431_v49 }
 0x1f1   : > { %v3107_v21 = vpop.permute.xlu1 %3106  ;;  %2168 = vmatpush1.msra.mxu0 %v1066_v32  ;;  %3490 = vmatmul.mubr.msk.f32.vlgmr.msra.gmra.mxu1 %vm1973_vm7, %v1078_v38 }
 0x1f2   : > { %3436 = vmatmul.mubr.msk.f32.vlgmr.msra.gmra.mxu0 %vm1973_vm7, %v1078_v38  ;;  %3502 = vmatprep.mubr.msk.f32.mxu1 %vm3610_vm0, %v5431_v49  ;;  %v3123_v9 = vsel %vm263_vm1, %v3107_v21, %v3111_v50 }
 0x1f3   : > { %v2827_v8 = vpop.permute.xlu0 %2826  ;;  %3247 = vmatprep.mubr.f32.mxu0 %v5431_v49 }
 0x1f5   : > { %v2823_v62 = vpop.permute.xlu1 %2822 }
 0x1f6   : > { %v2839_v39 = vsel %vm263_vm1, %v2823_v62, %v2827_v8 }
 0x1f7   : > { %v2919_v15 = vpop.permute.xlu0 %2918 }
 0x1f9   : > { %v2915_v58 = vpop.permute.xlu1 %2914 }
 0x1fa   : > { %v2931_v46 = vsel %vm263_vm1, %v2915_v58, %v2919_v15 }
 0x1fb   : > { %v3023_v28 = vpop.permute.xlu0 %3022 }
 0x1fc   : > { %v3029_v20 = vsel %vm267_vm4, %v3028_v11, %v3023_v28  ;;  %v3154_v31 = vrot.slane %v3023_v28, 4 }
 0x1fd   : > { %v3007_v30 = vpop.permute.xlu1 %3006  ;;  %v3153_v23 = vrot.slane %v3029_v20, 4 }
 0x1fe   : > { %v3025_v47 = vsel %vm259_vm2, %v4772_v51, %v3007_v30 }
 0x1ff   : > { %v2831_v3 = vpop.permute.xlu0 %2830  ;;  %v3026_v41 = vsel %vm261_vm6, %v3025_v47, %v5221_v36 }
 0x200   : > { %v3152_v0 = vrot.slane %v3026_v41, 4  ;;  %v2840_v1 = vsel %vm265_vm3, %v2839_v39, %v2831_v3 }
 0x201   : > { %v3115_v33 = vpop.permute.xlu1 %3114 }
 0x202   : > { %v3124_v14 = vsel %vm265_vm3, %v3123_v9, %v3115_v33 }
 0x203   : > { %v3103_v34 = vpop.permute.xlu0 %3102 }
 0x204   : > { %v3121_v18 = vsel %vm259_vm2, %v4815_v61, %v3103_v34 }
 0x205   : > { %v2923_v42 = vpop.permute.xlu1 %2922  ;;  %v3122_v26 = vsel %vm261_vm6, %v3121_v18, %v3107_v21 }
 0x206   : > { %v2932_v19 = vsel %vm265_vm3, %v2931_v46, %v2923_v42 }
 0x207   : > { %v5264_v43 = vpop.permute.xlu0 %2630 }
 0x209   : > { %v3119_v56 = vpop.permute.xlu1 %3118 }
 0x20a   : > { %v3125_v37 = vsel %vm267_vm4, %v3124_v14, %v3119_v56  ;;  %3493 = vmatpush3.msk.msra.mxu1 %vm1065_vm5, %v3119_v56 }
 0x20b   : > { %3440 = vmatprep.subr.msk.mxu0 %vm1065_vm5, %v3125_v37  ;;  %v2727_v54 = vpop.permute.xlu0 %2726  ;;  %3494 = vmatprep.subr.mxu1 %v5431_v49 }
 0x20c   : > { %3441 = vmatpush1.msk.msra.mxu0 %vm1065_vm5, %v3122_v26 }
 0x20d   : > { %v5276_v12 = vpop.permute.xlu1 %2634 }
 0x20e   : > { %v2647_v37 = vsel %vm263_vm1, %v5264_v43, %v5276_v12 }
 0x20f   : > { %v2819_v7 = vpop.permute.xlu0 %2818 }
 0x210   : > { %v2837_v55 = vsel %vm259_vm2, %v4876_v13, %v2819_v7 }
 0x211   : > { %v2731_v61 = vpop.permute.xlu1 %2730  ;;  %v2838_v16 = vsel %vm261_vm6, %v2837_v55, %v2823_v62 }
 0x212   : > { %v2743_v21 = vsel %vm263_vm1, %v2727_v54, %v2731_v61  ;;  %v3144_v30 = vrot.slane %v2838_v16, 4 }
 0x213   : > { %v2911_v40 = vpop.permute.xlu0 %2910 }
 0x214   : > { %v2929_v6 = vsel %vm259_vm2, %v4882_v10, %v2911_v40 }
 0x215   : > { %v2835_v2 = vpop.permute.xlu1 %2834  ;;  %v2930_v51 = vsel %vm261_vm6, %v2929_v6, %v2915_v58 }
 0x216   : > { %v3167_v52 = vsel %vm1065_vm5, %v2930_v51, %v3152_v0  ;;  %v2841_v60 = vsel %vm267_vm4, %v2840_v1, %v2835_v2  ;;  %v3146_v15 = vrot.slane %v2835_v2, 4 }
 0x217   : > { %v2639_v45 = vpop.permute.xlu0 %2638  ;;  %v3145_v58 = vrot.slane %v2841_v60, 4 }
 0x218   : > { %v2648_v26 = vsel %vm265_vm3, %v2647_v37, %v2639_v45 }
 0x219   : > { %v2927_v22 = vpop.permute.xlu1 %2926 }
 0x21a   : > { %v2933_v53 = vsel %vm267_vm4, %v2932_v19, %v2927_v22  ;;  %v3169_v4 = vsel %vm1065_vm5, %v2927_v22, %v3154_v31 }
 0x21b   : > { %3495 = vmatpush3.msra.mxu1 %v3169_v4  ;;  %v5293_v10 = vpop.permute.xlu0 %2442  ;;  %v3168_v36 = vsel %vm1065_vm5, %v2933_v53, %v3153_v23  ;;  %v3439_v4 = vld [vmem:[%s5376_s0 + $0x10] sm:$0xff] }
 0x21c   : > { %3207 = vmatprep.subr.mxu0 %v3168_v36  ;;  %3496 = vmatprep.subr.mxu1 %v5431_v49 }
 0x21d   : > { %v2735_v24 = vpop.permute.xlu1 %2734  ;;  %3208 = vmatpush1.msra.mxu0 %v3167_v52 }
 0x21e   : > { %v2744_v8 = vsel %vm265_vm3, %v2743_v21, %v2735_v24 }
 0x21f   : > { %v2539_v59 = vpop.permute.xlu0 %2538 }
 0x221   : > { %v2447_v29 = vpop.permute.xlu1 %2446 }
 0x222   : > { %v2459_v7 = vsel %vm263_vm1, %v5293_v10, %v2447_v29 }
 0x223   : > { %v2627_v25 = vpop.permute.xlu0 %2626 }
 0x224   : > { %v2645_v14 = vsel %vm259_vm2, %v4993_v27, %v2627_v25 }
 0x225   : > { %v2543_v17 = vpop.permute.xlu1 %2542  ;;  %v2646_v61 = vsel %vm261_vm6, %v2645_v14, %v5264_v43 }
 0x226   : > { %v2555_v11 = vsel %vm263_vm1, %v2539_v59, %v2543_v17  ;;  %v3136_v6 = vrot.slane %v2646_v61, 4 }
 0x227   : > { %v2723_v44 = vpop.permute.xlu0 %2722 }
 0x228   : > { %v2741_v50 = vsel %vm259_vm2, %v5009_v5, %v2723_v44 }
 0x229   : > { %v2643_v38 = vpop.permute.xlu1 %2642  ;;  %v2742_v28 = vsel %vm261_vm6, %v2741_v50, %v2727_v54 }
 0x22a   : > { %v3164_v62 = vsel %vm1065_vm5, %v2742_v28, %v3144_v30  ;;  %v2649_v63 = vsel %vm267_vm4, %v2648_v26, %v2643_v38  ;;  %v3138_v12 = vrot.slane %v2643_v38, 4 }
 0x22b   : > { %v2451_v32 = vpop.permute.xlu0 %2450  ;;  %v3137_v41 = vrot.slane %v2649_v63, 4 }
 0x22c   : > { %v2460_v27 = vsel %vm265_vm3, %v2459_v7, %v2451_v32 }
 0x22d   : > { %v2739_v13 = vpop.permute.xlu1 %2738 }
 0x22e   : > { %v2745_v3 = vsel %vm267_vm4, %v2744_v8, %v2739_v13  ;;  %v3166_v33 = vsel %vm1065_vm5, %v2739_v13, %v3146_v15 }
 0x22f   : > { %3497 = vmatpush3.msra.mxu1 %v3166_v33  ;;  %v2343_v34 = vpop.permute.xlu0 %2342  ;;  %v3165_v5 = vsel %vm1065_vm5, %v2745_v3, %v3145_v58 }
 0x230   : > { %3209 = vmatprep.subr.mxu0 %v3165_v5  ;;  %3498 = vmatprep.subr.mxu1 %v5431_v49 }
 0x231   : > { %v2547_v42 = vpop.permute.xlu1 %2546  ;;  %3210 = vmatpush1.msra.mxu0 %v3164_v62 }
 0x232   : > { %v2556_v43 = vsel %vm265_vm3, %v2555_v11, %v2547_v42 }
 0x233   : > { %v2439_v9 = vpop.permute.xlu0 %2438 }
 0x234   : > { %v2457_v2 = vsel %vm259_vm2, %v5105_v48, %v2439_v9 }
 0x235   : > { %v2347_v18 = vpop.permute.xlu1 %2346  ;;  %v2458_v51 = vsel %vm261_vm6, %v2457_v2, %v5293_v10 }
 0x236   : > { %v3128_v29 = vrot.slane %v2458_v51, 4 }
 0x237   : > { %v2535_v56 = vpop.permute.xlu0 %2534 }
 0x238   : > { %v2553_v40 = vsel %vm259_vm2, %v5123_v57, %v2535_v56  ;;  %v2359_v57 = vsel %vm263_vm1, %v2343_v34, %v2347_v18 }
 0x239   : > { %v2455_v54 = vpop.permute.xlu1 %2454  ;;  %v2554_v45 = vsel %vm261_vm6, %v2553_v40, %v2539_v59 }
 0x23a   : > { %v2461_v20 = vsel %vm267_vm4, %v2460_v27, %v2455_v54  ;;  %v3130_v31 = vrot.slane %v2455_v54, 4  ;;  %v3161_v10 = vsel %vm1065_vm5, %v2554_v45, %v3136_v6 }
 0x23b   : > { %v2351_v47 = vpop.permute.xlu0 %2350  ;;  %v3129_v48 = vrot.slane %v2461_v20, 4 }
 0x23c   : > { %v2360_v22 = vsel %vm265_vm3, %v2359_v57, %v2351_v47 }
 0x23d   : > { %v2551_v46 = vpop.permute.xlu1 %2550 }
 0x23e   : > { %v2557_v23 = vsel %vm267_vm4, %v2556_v43, %v2551_v46  ;;  %v3163_v19 = vsel %vm1065_vm5, %v2551_v46, %v3138_v12 }
 0x23f   : > { %3499 = vmatpush3.msra.mxu1 %v3163_v19  ;;  %v2355_v0 = vpop.permute.xlu0 %2354  ;;  %v3162_v53 = vsel %vm1065_vm5, %v2557_v23, %v3137_v41 }
 0x240   : > { %v2361_v36 = vsel %vm267_vm4, %v2360_v22, %v2355_v0  ;;  %v3160_v52 = vsel %vm1065_vm5, %v2355_v0, %v3130_v31  ;;  %3211 = vmatprep.subr.mxu0 %v3162_v53  ;;  %3500 = vmatprep.subr.mxu1 %v5431_v49 }
 0x241   : > { %v2339_v24 = vpop.permute.xlu1 %2338  ;;  %3212 = vmatpush1.msra.mxu0 %v3161_v10  ;;  %3501 = vmatpush3.msra.mxu1 %v3160_v52  ;;  %v3159_v59 = vsel %vm1065_vm5, %v2361_v36, %v3129_v48 }
 0x242   : > { %v2357_v25 = vsel %vm259_vm2, %v5137_v35, %v2339_v24  ;;  %3213 = vmatprep.subr.mxu0 %v3159_v59  ;;  %3503 = vmatmul.mubr.msk.f32.vlgmr.msra.gmra.mxu1 %vm1973_vm7, %v3439_v4 }
 0x243   : > { %v2358_v17 = vsel %vm261_vm6, %v2357_v25, %v2343_v34 }
 0x244   : > { %v3158_v49 = vsel %vm1065_vm5, %v2358_v17, %v3128_v29 }
 0x245   : > { %3214 = vmatpush1.msra.mxu0 %v3158_v49 }
 0x246   : > { %3442 = vmatmul.mubr.msk.f32.vlgmr.msra.gmra.mxu0 %vm1973_vm7, %v3439_v4 }
 0x27b   : > { %v2122_v44 = vpop.f32.mrf.mxu1 }
 0x27d   : > { %v3478_v39 = vpop.f32.mrf.mxu1 }
 0x27e   : > { %v2051_v35 = vpop.f32.mrf.mxu0 }
 0x280   : > { %v2053_v60 = vpop.f32.mrf.mxu0 }
 0x2b1   : > { %v2274_v55 = vpop.f32.mrf.mxu1 }
 0x2b2   : > { %v2275_v1 = vadd.f32 %v2274_v55, %v2122_v44  ;;  %v2203_v50 = vpop.f32.mrf.mxu0 }
 0x2b3   : > { %v3491_v38 = vpop.f32.mrf.mxu1  ;;  %v2204_v58 = vadd.f32 %v2203_v50, %v2051_v35 }
 0x2b4   : > { %v2205_v21 = vpop.f32.mrf.mxu0 }
 0x2b5   : > { %v2206_v28 = vadd.f32 %v2205_v21, %v2053_v60 }
 0x302   : > { %v3320_v16 = vpop.f32.mrf.mxu1 }
 0x303   : > { %v3326_v32 = vadd.f32 %v3320_v16, %v2275_v1 }
 0x304   : > { %v3504_v15 = vpop.f32.mrf.mxu1 }
 0x305   : > { %3330 = vst.msk [vmem:[%s165_s19 + $0x10] sm:$0xff] %vm3329_vm8, %v3326_v32 }
 0x306   : > { %v3249_v8 = vpop.f32.mrf.mxu0 }
 0x307   : > { %v3324_v13 = vadd.f32 %v3249_v8, %v2204_v58 }
 0x308   : > { %v3251_v30 = vpop.f32.mrf.mxu0 }
 0x309   : > { %3327 = vst [vmem:[%s165_s19] sm:$0xff] %v3324_v13  ;;  %v3325_v3 = vadd.f32 %v3251_v30, %v2206_v28 }
 0x30b   : > { %3328 = vst [vmem:[%s165_s19 + $0x8] sm:$0xff] %v3325_v3 }
 0x30c PF: > { %s12_s13 = sadd.s32 1, %s3599_s13   ;;  %s5497_s9 = smov %s3591_s11 }
 0x30d   : > { %p9_p7 = scmp.ge.s32.totalorder %s12_s13, 14   ;;  %s5498_s10 = smov %s3595_s12 }
 0x30e   : > { %s5499_s11 = smov %s5502_s14  ;;  %s5500_s12 = smov %s5506_s15 }
 0x30f   :  { %11 = sbr.rel (!%p9_p7) target bundleno = 3 (0x3), region = 61 }

</bundles_post_ra>
